<compile_context>
chip_gen: v6e
topology: v6e:2x2x1
jax: 0.10.0
libtpu: 0.0.40
codegen_flags: <defaults>
</compile_context>

<pallas_src>
import functools
import math

import jax
import jax.numpy as jnp
from jax.experimental import pallas as pl
from jax.experimental.pallas import tpu as pltpu

LN_EPS = 1e-5


def _layernorm(x, gamma, beta):
    mu = jnp.mean(x, axis=-1, keepdims=True)
    var = jnp.mean((x - mu) ** 2, axis=-1, keepdims=True)
    return (x - mu) * jax.lax.rsqrt(var + LN_EPS) * gamma + beta


def _gelu_exact(x):
    # PyTorch nn.GELU default (approximate='none'): 0.5*x*(1+erf(x/sqrt(2)))
    return 0.5 * x * (1.0 + jax.lax.erf(x * (1.0 / math.sqrt(2.0))))


def block_kernel(
    x_ref,                      # (B, N, C) f32
    g1_ref, b1_ref,             # (1, C)    f32
    wq_ref, wk_ref, wv_ref,     # (H, C, dh) bf16  (q pre-scaled by dh^-0.5)
    wp_ref, bp_ref,             # (H, dh, C) bf16, (1, C) f32
    g2_ref, b2_ref,             # (1, C)    f32
    w1_ref, bfc1_ref,           # (C, Hm) bf16, (1, Hm) f32
    w2_ref, bfc2_ref,           # (Hm, C) bf16, (1, C) f32
    o_ref,                      # (B, N, C) f32
    *, num_heads,
):
    f32 = jnp.float32
    bf16 = jnp.bfloat16

    B, N, C = x_ref.shape
    H = num_heads
    dh = C // H
    M = B * N
    G = B * H

    x = x_ref[...]
    xf = x.reshape(M, C)                          # leading-dim merge: free

    # ---- LayerNorm 1 (f32, M = B*N rows) ----
    h1 = _layernorm(xf, g1_ref[0], b1_ref[0])

    # ---- head-major q/k/v from host-packed (H, C, dh) weights ----
    # lhs replicated along heads -> (B*H, N, C); each projection is a single
    # standard batched matmul producing (B*H, N, dh) directly: no per-head
    # slicing, stacking, or cross-lane transposes inside the kernel.
    hb = h1.astype(bf16).reshape(B, N, C)
    hg = jnp.broadcast_to(hb[:, None], (B, H, N, C)).reshape(G, N, C)

    def head_proj(w_ref):                         # w: (H, C, dh) bf16
        wg = jnp.broadcast_to(w_ref[...][None], (B, H, C, dh)).reshape(G, C, dh)
        return jnp.einsum('gnc,gcd->gnd', hg, wg, preferred_element_type=f32)

    qg = head_proj(wq_ref).astype(bf16)           # attn scale folded into wq
    kg = head_proj(wk_ref).astype(bf16)
    vg = head_proj(wv_ref).astype(bf16)

    # ---- attention (f32 softmax, bf16 MXU operands) ----
    s = jnp.einsum('gqd,gkd->gqk', qg, kg, preferred_element_type=f32)
    s = s - jnp.max(s, axis=-1, keepdims=True)    # stable softmax, f32
    p = jnp.exp(s)
    p = p * pl.reciprocal(jnp.sum(p, axis=-1, keepdims=True), approx=True)
    ctx = jnp.einsum('gqk,gkd->gqd', p.astype(bf16), vg,
                     preferred_element_type=f32)  # (B*H, N, dh)

    # ---- output projection from head-major context (no concat) ----
    wpg = jnp.broadcast_to(wp_ref[...][None], (B, H, dh, C)).reshape(G, dh, C)
    yg = jnp.einsum('gnd,gdc->gnc', ctx.astype(bf16), wpg,
                    preferred_element_type=f32)   # (B*H, N, C)
    y = jnp.sum(yg.reshape(B, H, N, C), axis=1).reshape(M, C) + bp_ref[0]

    # ---- residual 1 (DropPath = identity in eval / drop_prob=0) ----
    x1 = xf + y

    # ---- LayerNorm 2 + MLP (M = B*N rows) + residual 2 ----
    h2 = _layernorm(x1, g2_ref[0], b2_ref[0])
    f1 = jnp.dot(h2.astype(bf16), w1_ref[...],
                 preferred_element_type=f32) + bfc1_ref[0]
    f1 = _gelu_exact(f1)                          # exact erf GELU, f32
    f2 = jnp.dot(f1.astype(bf16), w2_ref[...],
                 preferred_element_type=f32) + bfc2_ref[0]

    o_ref[...] = (x1 + f2).reshape(B, N, C)       # DropPath = identity


def prepare_block_params(params, num_heads):
    """One-time host-side weight packing (hoisted out of the per-call path).

    PyTorch (out,in) Linear weights -> (in,out); qkv/proj reshaped to per-head
    layouts (H, C, dh) / (H, dh, C); attention scale folded into the q weight;
    matmul weights cast bf16, biases / LN params kept f32.
    """
    C = params["ln1_g"].shape[0]
    Hm = params["fc1_w"].shape[0]
    dh = C // num_heads
    scale = dh ** (-0.5)

    qkv_w = params["qkv_w"].astype(jnp.float32)           # (3C, C) torch layout

    def to_heads(w_out_in):                               # (C, C_in) -> (H, C_in, dh)
        return jnp.transpose(w_out_in.reshape(num_heads, dh, C), (0, 2, 1))

    wq = (to_heads(qkv_w[0:C]) * scale).astype(jnp.bfloat16)
    wk = to_heads(qkv_w[C:2 * C]).astype(jnp.bfloat16)
    wv = to_heads(qkv_w[2 * C:3 * C]).astype(jnp.bfloat16)
    # proj: y[., co] = sum_{h,d} ctx[., h, d] * proj_w[co, h*dh+d] -> (H, dh, C)
    wp = params["proj_w"].T.reshape(num_heads, dh, C).astype(jnp.bfloat16)

    return (
        params["ln1_g"].reshape(1, C).astype(jnp.float32),
        params["ln1_b"].reshape(1, C).astype(jnp.float32),
        wq, wk, wv,
        wp, params["proj_b"].reshape(1, C).astype(jnp.float32),
        params["ln2_g"].reshape(1, C).astype(jnp.float32),
        params["ln2_b"].reshape(1, C).astype(jnp.float32),
        params["fc1_w"].T.astype(jnp.bfloat16),
        params["fc1_b"].reshape(1, Hm).astype(jnp.float32),
        params["fc2_w"].T.astype(jnp.bfloat16),
        params["fc2_b"].reshape(1, C).astype(jnp.float32),
    )


def _vmem_limit_bytes(need_bytes):
    """Generation-aware VMEM ceiling: headroom below v7x's 64 MiB physical
    VMEM; allow >64 MiB on the 128 MiB parts (v5e / v6e)."""
    try:
        cap = int(getattr(pltpu.get_tpu_info(), "vmem_capacity_bytes", 0)) or None
    except Exception:
        cap = None
    if cap is None:
        return int(min(64 << 20, max(16 << 20, need_bytes)))
    headroom = (12 << 20) if cap <= (64 << 20) else (24 << 20)
    return int(max(16 << 20, min(need_bytes, cap - headroom)))


def vit_block(x, packed_params, *, num_heads, drop_prob=0.0):
    """x: (B, N, C) f32, N a multiple of 8 (pad on host for real ViT shapes).
    packed_params: output of prepare_block_params() (computed once per model)."""
    # DropPath is the identity for drop_prob in (None, 0.0) / eval mode.
    assert drop_prob in (None, 0.0), "training-mode DropPath not supported here"

    B, N, C = x.shape
    Hm = packed_params[9].shape[1]                # fc1 weight is (C, Hm)
    dh = C // num_heads
    G = B * num_heads
    M = B * N

    args = (x.astype(jnp.float32),) + tuple(packed_params)

    def full_spec(shape):
        nd = len(shape)
        # Grid-invariant block (single grid step): fetched once, fully resident.
        return pl.BlockSpec(shape, lambda i: (0,) * nd)

    in_specs = [full_spec(a.shape) for a in args]
    out_spec = full_spec((B, N, C))

    # Rough residency estimate: weights (+ pipeline copies), x/out blocks and
    # in-kernel intermediates (replicated lhs, head-major q/k/v, scores,
    # per-head projection partials, MLP hidden).
    weight_bytes = sum(int(a.size) * a.dtype.itemsize for a in packed_params)
    io_bytes = 4 * (B * N * C * 4)
    inter_bytes = (
        4 * M * C * 4                 # xf / h / x1 / h2 style temporaries
        + G * N * C * (2 + 4)         # replicated lhs (bf16) + proj partials (f32)
        + 3 * G * N * dh * (4 + 2)    # q/k/v f32 accum + bf16 copies
        + 2 * G * N * N * 4           # scores / probs
        + 2 * M * Hm * 4              # MLP hidden
    )
    need = 2 * weight_bytes + io_bytes + 2 * inter_bytes

    kernel = functools.partial(block_kernel, num_heads=num_heads)

    return pl.pallas_call(
        kernel,
        out_shape=jax.ShapeDtypeStruct((B, N, C), jnp.float32),
        grid_spec=pltpu.PrefetchScalarGridSpec(
            num_scalar_prefetch=0,
            grid=(1,),                # batch folded into the matmul M dim
            in_specs=in_specs,
            out_specs=out_spec,
        ),
        compiler_params=pltpu.CompilerParams(
            dimension_semantics=("arbitrary",),
            vmem_limit_bytes=_vmem_limit_bytes(need),
        ),
    )(*args)


def make_params(key, dim, num_heads, mlp_ratio=4.0):
    hidden = int(dim * mlp_ratio)
    ks = jax.random.split(key, 4)
    std = 0.02
    return {
        "ln1_g": jnp.ones((dim,), jnp.float32),
        "ln1_b": jnp.zeros((dim,), jnp.float32),
        # qkv_bias=False in the default Block config -> no qkv bias at all.
        "qkv_w": std * jax.random.normal(ks[0], (3 * dim, dim), jnp.float32),
        "proj_w": std * jax.random.normal(ks[1], (dim, dim), jnp.float32),
        "proj_b": jnp.zeros((dim,), jnp.float32),
        "ln2_g": jnp.ones((dim,), jnp.float32),
        "ln2_b": jnp.zeros((dim,), jnp.float32),
        "fc1_w": std * jax.random.normal(ks[2], (hidden, dim), jnp.float32),
        "fc1_b": jnp.zeros((hidden,), jnp.float32),
        "fc2_w": std * jax.random.normal(ks[3], (dim, hidden), jnp.float32),
        "fc2_b": jnp.zeros((dim,), jnp.float32),
    }


def vit_block_reference(x, p, *, num_heads):
    """Pure-JAX f32 reference mirroring the PyTorch forward (eval mode)."""
    B, N, C = x.shape
    dh = C // num_heads
    scale = dh ** (-0.5)

    def ln(v, g, b):
        mu = jnp.mean(v, -1, keepdims=True)
        var = jnp.mean((v - mu) ** 2, -1, keepdims=True)
        return (v - mu) / jnp.sqrt(var + LN_EPS) * g + b

    h = ln(x, p["ln1_g"], p["ln1_b"])
    qkv = h @ p["qkv_w"].T                               # qkv_bias=False
    qkv = qkv.reshape(B, N, 3, num_heads, dh).transpose(2, 0, 3, 1, 4)
    q, k, v = qkv[0], qkv[1], qkv[2]
    attn = jax.nn.softmax((q @ jnp.swapaxes(k, -2, -1)) * scale, axis=-1)
    y = (attn @ v).transpose(0, 2, 1, 3).reshape(B, N, C)
    y = y @ p["proj_w"].T + p["proj_b"]
    x1 = x + y                                           # DropPath identity
    h2 = ln(x1, p["ln2_g"], p["ln2_b"])
    f = jax.nn.gelu(h2 @ p["fc1_w"].T + p["fc1_b"], approximate=False)
    f = f @ p["fc2_w"].T + p["fc2_b"]
    return x1 + f                                        # DropPath identity


if __name__ == "__main__":
    # Small but TPU-layout-friendly shapes: N multiple of 8 (sublane), C and
    # mlp hidden multiples of 128 (lane-dense stores).
    B, N, C = 2, 16, 128
    NUM_HEADS = 4            # head dim = 32

    key = jax.random.PRNGKey(0)
    kx, kp = jax.random.split(key)
    x = jax.random.normal(kx, (B, N, C), jnp.float32)
    params = make_params(kp, C, NUM_HEADS)

    # One-time host-side weight packing (per model, not per call).
    packed = jax.block_until_ready(prepare_block_params(params, NUM_HEADS))

    out = jax.block_until_ready(vit_block(x, packed, num_heads=NUM_HEADS))

    ref = vit_block_reference(x, params, num_heads=NUM_HEADS)
    assert out.shape == (B, N, C)
    err = float(jnp.max(jnp.abs(out - ref)))
    # bf16 matmul operands + approx reciprocal -> loosened tolerance vs f32 ref.
    assert err < 2e-2, f"mismatch vs reference: max|diff|={err}"
    print("KERNEL_OK")
</pallas_src>

<mosaic_0001>
module attributes {stable_mosaic.version = 11 : i64} {
  func.func @block_kernel(%arg0: i32, %arg1: memref<2x16x128xf32, #tpu.memory_space<vmem>>, %arg2: memref<1x128xf32, #tpu.memory_space<vmem>>, %arg3: memref<1x128xf32, #tpu.memory_space<vmem>>, %arg4: memref<4x128x32xbf16, #tpu.memory_space<vmem>>, %arg5: memref<4x128x32xbf16, #tpu.memory_space<vmem>>, %arg6: memref<4x128x32xbf16, #tpu.memory_space<vmem>>, %arg7: memref<4x32x128xbf16, #tpu.memory_space<vmem>>, %arg8: memref<1x128xf32, #tpu.memory_space<vmem>>, %arg9: memref<1x128xf32, #tpu.memory_space<vmem>>, %arg10: memref<1x128xf32, #tpu.memory_space<vmem>>, %arg11: memref<128x512xbf16, #tpu.memory_space<vmem>>, %arg12: memref<1x512xf32, #tpu.memory_space<vmem>>, %arg13: memref<512x128xbf16, #tpu.memory_space<vmem>>, %arg14: memref<1x128xf32, #tpu.memory_space<vmem>>, %arg15: memref<2x16x128xf32, #tpu.memory_space<vmem>>) attributes {dimension_semantics = [#tpu.dimension_semantics<arbitrary>], iteration_bounds = array<i64: 1>, scalar_prefetch = 0 : i64, scratch_operands = 0 : i64, tpu.core_type = #tpu.core_type<tc>, window_params = [{pipeline_mode = #tpu.pipeline_mode<synchronous>, transform_indices = @transform_0, window_bounds = array<i64: 2, 16, 128>}, {pipeline_mode = #tpu.pipeline_mode<synchronous>, transform_indices = @transform_1, window_bounds = array<i64: 1, 128>}, {pipeline_mode = #tpu.pipeline_mode<synchronous>, transform_indices = @transform_2, window_bounds = array<i64: 1, 128>}, {pipeline_mode = #tpu.pipeline_mode<synchronous>, transform_indices = @transform_3, window_bounds = array<i64: 4, 128, 32>}, {pipeline_mode = #tpu.pipeline_mode<synchronous>, transform_indices = @transform_4, window_bounds = array<i64: 4, 128, 32>}, {pipeline_mode = #tpu.pipeline_mode<synchronous>, transform_indices = @transform_5, window_bounds = array<i64: 4, 128, 32>}, {pipeline_mode = #tpu.pipeline_mode<synchronous>, transform_indices = @transform_6, window_bounds = array<i64: 4, 32, 128>}, {pipeline_mode = #tpu.pipeline_mode<synchronous>, transform_indices = @transform_7, window_bounds = array<i64: 1, 128>}, {pipeline_mode = #tpu.pipeline_mode<synchronous>, transform_indices = @transform_8, window_bounds = array<i64: 1, 128>}, {pipeline_mode = #tpu.pipeline_mode<synchronous>, transform_indices = @transform_9, window_bounds = array<i64: 1, 128>}, {pipeline_mode = #tpu.pipeline_mode<synchronous>, transform_indices = @transform_10, window_bounds = array<i64: 128, 512>}, {pipeline_mode = #tpu.pipeline_mode<synchronous>, transform_indices = @transform_11, window_bounds = array<i64: 1, 512>}, {pipeline_mode = #tpu.pipeline_mode<synchronous>, transform_indices = @transform_12, window_bounds = array<i64: 512, 128>}, {pipeline_mode = #tpu.pipeline_mode<synchronous>, transform_indices = @transform_13, window_bounds = array<i64: 1, 128>}, {pipeline_mode = #tpu.pipeline_mode<synchronous>, transform_indices = @transform_14, window_bounds = array<i64: 2, 16, 128>}]} {
    %c0 = arith.constant 0 : index
    %c0_0 = arith.constant 0 : index
    %c0_1 = arith.constant 0 : index
    %0 = vector.load %arg1[%c0, %c0_0, %c0_1] : memref<2x16x128xf32, #tpu.memory_space<vmem>>, vector<2x16x128xf32>
    %1 = vector.shape_cast %0 : vector<2x16x128xf32> to vector<32x128xf32>
    %c0_2 = arith.constant 0 : index
    %c0_3 = arith.constant 0 : index
    %2 = vector.load %arg2[%c0_2, %c0_3] : memref<1x128xf32, #tpu.memory_space<vmem>>, vector<1x128xf32>
    %3 = vector.shape_cast %2 : vector<1x128xf32> to vector<128xf32>
    %c0_4 = arith.constant 0 : index
    %c0_5 = arith.constant 0 : index
    %4 = vector.load %arg3[%c0_4, %c0_5] : memref<1x128xf32, #tpu.memory_space<vmem>>, vector<1x128xf32>
    %5 = vector.shape_cast %4 : vector<1x128xf32> to vector<128xf32>
    %cst = arith.constant dense<0.000000e+00> : vector<32xf32>
    %6 = vector.multi_reduction <add>, %1, %cst [1] : vector<32x128xf32> to vector<32xf32>
    %7 = vector.shape_cast %6 : vector<32xf32> to vector<32x1xf32>
    %cst_6 = arith.constant 1.280000e+02 : f32
    %8 = vector.broadcast %cst_6 : f32 to vector<32x1xf32>
    %9 = arith.divf %7, %8 : vector<32x1xf32>
    %10 = vector.broadcast %9 : vector<32x1xf32> to vector<32x128xf32>
    %11 = arith.subf %1, %10 : vector<32x128xf32>
    %12 = arith.mulf %11, %11 : vector<32x128xf32>
    %cst_7 = arith.constant dense<0.000000e+00> : vector<32xf32>
    %13 = vector.multi_reduction <add>, %12, %cst_7 [1] : vector<32x128xf32> to vector<32xf32>
    %14 = vector.shape_cast %13 : vector<32xf32> to vector<32x1xf32>
    %cst_8 = arith.constant 1.280000e+02 : f32
    %15 = vector.broadcast %cst_8 : f32 to vector<32x1xf32>
    %16 = arith.divf %14, %15 : vector<32x1xf32>
    %17 = vector.broadcast %9 : vector<32x1xf32> to vector<32x128xf32>
    %18 = arith.subf %1, %17 : vector<32x128xf32>
    %cst_9 = arith.constant 9.99999974E-6 : f32
    %19 = vector.broadcast %cst_9 : f32 to vector<32x1xf32>
    %20 = arith.addf %16, %19 : vector<32x1xf32>
    %21 = math.rsqrt %20 : vector<32x1xf32>
    %22 = vector.broadcast %21 : vector<32x1xf32> to vector<32x128xf32>
    %23 = arith.mulf %18, %22 : vector<32x128xf32>
    %24 = vector.shape_cast %3 : vector<128xf32> to vector<1x128xf32>
    %25 = vector.broadcast %24 : vector<1x128xf32> to vector<32x128xf32>
    %26 = arith.mulf %23, %25 : vector<32x128xf32>
    %27 = vector.shape_cast %5 : vector<128xf32> to vector<1x128xf32>
    %28 = vector.broadcast %27 : vector<1x128xf32> to vector<32x128xf32>
    %29 = arith.addf %26, %28 : vector<32x128xf32>
    %30 = arith.truncf %29 : vector<32x128xf32> to vector<32x128xbf16>
    %31 = vector.shape_cast %30 : vector<32x128xbf16> to vector<2x16x128xbf16>
    %32 = vector.shape_cast %31 : vector<2x16x128xbf16> to vector<2x1x16x128xbf16>
    %33 = vector.shape_cast %32 : vector<2x1x16x128xbf16> to vector<2x1x16x128xbf16>
    %34 = vector.broadcast %33 : vector<2x1x16x128xbf16> to vector<2x4x16x128xbf16>
    %35 = vector.shape_cast %34 : vector<2x4x16x128xbf16> to vector<8x16x128xbf16>
    %c0_10 = arith.constant 0 : index
    %c0_11 = arith.constant 0 : index
    %c0_12 = arith.constant 0 : index
    %36 = vector.load %arg4[%c0_10, %c0_11, %c0_12] : memref<4x128x32xbf16, #tpu.memory_space<vmem>>, vector<4x128x32xbf16>
    %37 = vector.shape_cast %36 : vector<4x128x32xbf16> to vector<1x4x128x32xbf16>
    %38 = vector.shape_cast %37 : vector<1x4x128x32xbf16> to vector<1x4x128x32xbf16>
    %39 = vector.broadcast %38 : vector<1x4x128x32xbf16> to vector<2x4x128x32xbf16>
    %40 = vector.shape_cast %39 : vector<2x4x128x32xbf16> to vector<8x128x32xbf16>
    "tpu.trace_start"() <{level = 10 : i32, message = "gnc,gcd->gnd"}> : () -> ()
    %cst_13 = arith.constant dense<0.000000e+00> : vector<8x16x32xf32>
    %41 = tpu.matmul %35, %40, %cst_13 {dimension_numbers = #tpu.dot_dimension_numbers<[2], [1], [1], [2], [0, 0, 0, 1, 1, 2], [0], [0]>} : vector<8x16x128xbf16>, vector<8x128x32xbf16>, vector<8x16x32xf32> -> vector<8x16x32xf32>
    "tpu.trace_stop"() : () -> ()
    %42 = arith.truncf %41 : vector<8x16x32xf32> to vector<8x16x32xbf16>
    %c0_14 = arith.constant 0 : index
    %c0_15 = arith.constant 0 : index
    %c0_16 = arith.constant 0 : index
    %43 = vector.load %arg5[%c0_14, %c0_15, %c0_16] : memref<4x128x32xbf16, #tpu.memory_space<vmem>>, vector<4x128x32xbf16>
    %44 = vector.shape_cast %43 : vector<4x128x32xbf16> to vector<1x4x128x32xbf16>
    %45 = vector.shape_cast %44 : vector<1x4x128x32xbf16> to vector<1x4x128x32xbf16>
    %46 = vector.broadcast %45 : vector<1x4x128x32xbf16> to vector<2x4x128x32xbf16>
    %47 = vector.shape_cast %46 : vector<2x4x128x32xbf16> to vector<8x128x32xbf16>
    "tpu.trace_start"() <{level = 10 : i32, message = "gnc,gcd->gnd"}> : () -> ()
    %cst_17 = arith.constant dense<0.000000e+00> : vector<8x16x32xf32>
    %48 = tpu.matmul %35, %47, %cst_17 {dimension_numbers = #tpu.dot_dimension_numbers<[2], [1], [1], [2], [0, 0, 0, 1, 1, 2], [0], [0]>} : vector<8x16x128xbf16>, vector<8x128x32xbf16>, vector<8x16x32xf32> -> vector<8x16x32xf32>
    "tpu.trace_stop"() : () -> ()
    %49 = arith.truncf %48 : vector<8x16x32xf32> to vector<8x16x32xbf16>
    %c0_18 = arith.constant 0 : index
    %c0_19 = arith.constant 0 : index
    %c0_20 = arith.constant 0 : index
    %50 = vector.load %arg6[%c0_18, %c0_19, %c0_20] : memref<4x128x32xbf16, #tpu.memory_space<vmem>>, vector<4x128x32xbf16>
    %51 = vector.shape_cast %50 : vector<4x128x32xbf16> to vector<1x4x128x32xbf16>
    %52 = vector.shape_cast %51 : vector<1x4x128x32xbf16> to vector<1x4x128x32xbf16>
    %53 = vector.broadcast %52 : vector<1x4x128x32xbf16> to vector<2x4x128x32xbf16>
    %54 = vector.shape_cast %53 : vector<2x4x128x32xbf16> to vector<8x128x32xbf16>
    "tpu.trace_start"() <{level = 10 : i32, message = "gnc,gcd->gnd"}> : () -> ()
    %cst_21 = arith.constant dense<0.000000e+00> : vector<8x16x32xf32>
    %55 = tpu.matmul %35, %54, %cst_21 {dimension_numbers = #tpu.dot_dimension_numbers<[2], [1], [1], [2], [0, 0, 0, 1, 1, 2], [0], [0]>} : vector<8x16x128xbf16>, vector<8x128x32xbf16>, vector<8x16x32xf32> -> vector<8x16x32xf32>
    "tpu.trace_stop"() : () -> ()
    %56 = arith.truncf %55 : vector<8x16x32xf32> to vector<8x16x32xbf16>
    "tpu.trace_start"() <{level = 10 : i32, message = "gqd,gkd->gqk"}> : () -> ()
    %cst_22 = arith.constant dense<0.000000e+00> : vector<8x16x16xf32>
    %57 = tpu.matmul %42, %49, %cst_22 {dimension_numbers = #tpu.dot_dimension_numbers<[2], [2], [1], [1], [0, 0, 0, 1, 1, 1], [0], [0]>} : vector<8x16x32xbf16>, vector<8x16x32xbf16>, vector<8x16x16xf32> -> vector<8x16x16xf32>
    "tpu.trace_stop"() : () -> ()
    %cst_23 = arith.constant dense<0xFF800000> : vector<8x16xf32>
    %58 = vector.multi_reduction <maximumf>, %57, %cst_23 [2] : vector<8x16x16xf32> to vector<8x16xf32>
    %59 = vector.shape_cast %58 : vector<8x16xf32> to vector<8x16x1xf32>
    %60 = vector.broadcast %59 : vector<8x16x1xf32> to vector<8x16x16xf32>
    %61 = arith.subf %57, %60 : vector<8x16x16xf32>
    %62 = math.exp %61 : vector<8x16x16xf32>
    %cst_24 = arith.constant dense<0.000000e+00> : vector<8x16xf32>
    %63 = vector.multi_reduction <add>, %62, %cst_24 [2] : vector<8x16x16xf32> to vector<8x16xf32>
    %64 = vector.shape_cast %63 : vector<8x16xf32> to vector<8x16x1xf32>
    %65 = tpu.reciprocal %64 {approx = true} : vector<8x16x1xf32> -> vector<8x16x1xf32>
    %66 = vector.broadcast %65 : vector<8x16x1xf32> to vector<8x16x16xf32>
    %67 = arith.mulf %62, %66 : vector<8x16x16xf32>
    %68 = arith.truncf %67 : vector<8x16x16xf32> to vector<8x16x16xbf16>
    "tpu.trace_start"() <{level = 10 : i32, message = "gqk,gkd->gqd"}> : () -> ()
    %cst_25 = arith.constant dense<0.000000e+00> : vector<8x16x32xf32>
    %69 = tpu.matmul %68, %56, %cst_25 {dimension_numbers = #tpu.dot_dimension_numbers<[2], [1], [1], [2], [0, 0, 0, 1, 1, 2], [0], [0]>} : vector<8x16x16xbf16>, vector<8x16x32xbf16>, vector<8x16x32xf32> -> vector<8x16x32xf32>
    "tpu.trace_stop"() : () -> ()
    %c0_26 = arith.constant 0 : index
    %c0_27 = arith.constant 0 : index
    %c0_28 = arith.constant 0 : index
    %70 = vector.load %arg7[%c0_26, %c0_27, %c0_28] : memref<4x32x128xbf16, #tpu.memory_space<vmem>>, vector<4x32x128xbf16>
    %71 = vector.shape_cast %70 : vector<4x32x128xbf16> to vector<1x4x32x128xbf16>
    %72 = vector.shape_cast %71 : vector<1x4x32x128xbf16> to vector<1x4x32x128xbf16>
    %73 = vector.broadcast %72 : vector<1x4x32x128xbf16> to vector<2x4x32x128xbf16>
    %74 = vector.shape_cast %73 : vector<2x4x32x128xbf16> to vector<8x32x128xbf16>
    %75 = arith.truncf %69 : vector<8x16x32xf32> to vector<8x16x32xbf16>
    "tpu.trace_start"() <{level = 10 : i32, message = "gnd,gdc->gnc"}> : () -> ()
    %cst_29 = arith.constant dense<0.000000e+00> : vector<8x16x128xf32>
    %76 = tpu.matmul %75, %74, %cst_29 {dimension_numbers = #tpu.dot_dimension_numbers<[2], [1], [1], [2], [0, 0, 0, 1, 1, 2], [0], [0]>} : vector<8x16x32xbf16>, vector<8x32x128xbf16>, vector<8x16x128xf32> -> vector<8x16x128xf32>
    "tpu.trace_stop"() : () -> ()
    %77 = vector.shape_cast %76 : vector<8x16x128xf32> to vector<2x4x16x128xf32>
    %cst_30 = arith.constant dense<0.000000e+00> : vector<2x16x128xf32>
    %78 = vector.multi_reduction <add>, %77, %cst_30 [1] : vector<2x4x16x128xf32> to vector<2x16x128xf32>
    %79 = vector.shape_cast %78 : vector<2x16x128xf32> to vector<32x128xf32>
    %c0_31 = arith.constant 0 : index
    %c0_32 = arith.constant 0 : index
    %80 = vector.load %arg8[%c0_31, %c0_32] : memref<1x128xf32, #tpu.memory_space<vmem>>, vector<1x128xf32>
    %81 = vector.shape_cast %80 : vector<1x128xf32> to vector<128xf32>
    %82 = vector.shape_cast %81 : vector<128xf32> to vector<1x128xf32>
    %83 = vector.broadcast %82 : vector<1x128xf32> to vector<32x128xf32>
    %84 = arith.addf %79, %83 : vector<32x128xf32>
    %85 = arith.addf %1, %84 : vector<32x128xf32>
    %c0_33 = arith.constant 0 : index
    %c0_34 = arith.constant 0 : index
    %86 = vector.load %arg9[%c0_33, %c0_34] : memref<1x128xf32, #tpu.memory_space<vmem>>, vector<1x128xf32>
    %87 = vector.shape_cast %86 : vector<1x128xf32> to vector<128xf32>
    %c0_35 = arith.constant 0 : index
    %c0_36 = arith.constant 0 : index
    %88 = vector.load %arg10[%c0_35, %c0_36] : memref<1x128xf32, #tpu.memory_space<vmem>>, vector<1x128xf32>
    %89 = vector.shape_cast %88 : vector<1x128xf32> to vector<128xf32>
    %cst_37 = arith.constant dense<0.000000e+00> : vector<32xf32>
    %90 = vector.multi_reduction <add>, %85, %cst_37 [1] : vector<32x128xf32> to vector<32xf32>
    %91 = vector.shape_cast %90 : vector<32xf32> to vector<32x1xf32>
    %cst_38 = arith.constant 1.280000e+02 : f32
    %92 = vector.broadcast %cst_38 : f32 to vector<32x1xf32>
    %93 = arith.divf %91, %92 : vector<32x1xf32>
    %94 = vector.broadcast %93 : vector<32x1xf32> to vector<32x128xf32>
    %95 = arith.subf %85, %94 : vector<32x128xf32>
    %96 = arith.mulf %95, %95 : vector<32x128xf32>
    %cst_39 = arith.constant dense<0.000000e+00> : vector<32xf32>
    %97 = vector.multi_reduction <add>, %96, %cst_39 [1] : vector<32x128xf32> to vector<32xf32>
    %98 = vector.shape_cast %97 : vector<32xf32> to vector<32x1xf32>
    %cst_40 = arith.constant 1.280000e+02 : f32
    %99 = vector.broadcast %cst_40 : f32 to vector<32x1xf32>
    %100 = arith.divf %98, %99 : vector<32x1xf32>
    %101 = vector.broadcast %93 : vector<32x1xf32> to vector<32x128xf32>
    %102 = arith.subf %85, %101 : vector<32x128xf32>
    %cst_41 = arith.constant 9.99999974E-6 : f32
    %103 = vector.broadcast %cst_41 : f32 to vector<32x1xf32>
    %104 = arith.addf %100, %103 : vector<32x1xf32>
    %105 = math.rsqrt %104 : vector<32x1xf32>
    %106 = vector.broadcast %105 : vector<32x1xf32> to vector<32x128xf32>
    %107 = arith.mulf %102, %106 : vector<32x128xf32>
    %108 = vector.shape_cast %87 : vector<128xf32> to vector<1x128xf32>
    %109 = vector.broadcast %108 : vector<1x128xf32> to vector<32x128xf32>
    %110 = arith.mulf %107, %109 : vector<32x128xf32>
    %111 = vector.shape_cast %89 : vector<128xf32> to vector<1x128xf32>
    %112 = vector.broadcast %111 : vector<1x128xf32> to vector<32x128xf32>
    %113 = arith.addf %110, %112 : vector<32x128xf32>
    %114 = arith.truncf %113 : vector<32x128xf32> to vector<32x128xbf16>
    %c0_42 = arith.constant 0 : index
    %c0_43 = arith.constant 0 : index
    %115 = vector.load %arg11[%c0_42, %c0_43] : memref<128x512xbf16, #tpu.memory_space<vmem>>, vector<128x512xbf16>
    %cst_44 = arith.constant dense<0.000000e+00> : vector<32x512xf32>
    %116 = tpu.matmul %114, %115, %cst_44 {dimension_numbers = #tpu.dot_dimension_numbers<[1], [0], [0], [1], [0, 0, 1, 1], [], []>} : vector<32x128xbf16>, vector<128x512xbf16>, vector<32x512xf32> -> vector<32x512xf32>
    %c0_45 = arith.constant 0 : index
    %c0_46 = arith.constant 0 : index
    %117 = vector.load %arg12[%c0_45, %c0_46] : memref<1x512xf32, #tpu.memory_space<vmem>>, vector<1x512xf32>
    %118 = vector.shape_cast %117 : vector<1x512xf32> to vector<512xf32>
    %119 = vector.shape_cast %118 : vector<512xf32> to vector<1x512xf32>
    %120 = vector.broadcast %119 : vector<1x512xf32> to vector<32x512xf32>
    %121 = arith.addf %116, %120 : vector<32x512xf32>
    %cst_47 = arith.constant 5.000000e-01 : f32
    %122 = vector.broadcast %cst_47 : f32 to vector<32x512xf32>
    %123 = arith.mulf %122, %121 : vector<32x512xf32>
    %cst_48 = arith.constant 0.707106769 : f32
    %124 = vector.broadcast %cst_48 : f32 to vector<32x512xf32>
    %125 = arith.mulf %121, %124 : vector<32x512xf32>
    %126 = math.erf %125 : vector<32x512xf32>
    %cst_49 = arith.constant 1.000000e+00 : f32
    %127 = vector.broadcast %cst_49 : f32 to vector<32x512xf32>
    %128 = arith.addf %127, %126 : vector<32x512xf32>
    %129 = arith.mulf %123, %128 : vector<32x512xf32>
    %130 = arith.truncf %129 : vector<32x512xf32> to vector<32x512xbf16>
    %c0_50 = arith.constant 0 : index
    %c0_51 = arith.constant 0 : index
    %131 = vector.load %arg13[%c0_50, %c0_51] : memref<512x128xbf16, #tpu.memory_space<vmem>>, vector<512x128xbf16>
    %cst_52 = arith.constant dense<0.000000e+00> : vector<32x128xf32>
    %132 = tpu.matmul %130, %131, %cst_52 {dimension_numbers = #tpu.dot_dimension_numbers<[1], [0], [0], [1], [0, 0, 1, 1], [], []>} : vector<32x512xbf16>, vector<512x128xbf16>, vector<32x128xf32> -> vector<32x128xf32>
    %c0_53 = arith.constant 0 : index
    %c0_54 = arith.constant 0 : index
    %133 = vector.load %arg14[%c0_53, %c0_54] : memref<1x128xf32, #tpu.memory_space<vmem>>, vector<1x128xf32>
    %134 = vector.shape_cast %133 : vector<1x128xf32> to vector<128xf32>
    %135 = vector.shape_cast %134 : vector<128xf32> to vector<1x128xf32>
    %136 = vector.broadcast %135 : vector<1x128xf32> to vector<32x128xf32>
    %137 = arith.addf %132, %136 : vector<32x128xf32>
    %138 = arith.addf %85, %137 : vector<32x128xf32>
    %139 = vector.shape_cast %138 : vector<32x128xf32> to vector<2x16x128xf32>
    %c0_55 = arith.constant 0 : index
    %c0_56 = arith.constant 0 : index
    %c0_57 = arith.constant 0 : index
    %140 = vector.load %arg15[%c0_55, %c0_56, %c0_57] : memref<2x16x128xf32, #tpu.memory_space<vmem>>, vector<2x16x128xf32>
    tpu.vector_store %arg15[%c0_55, %c0_56, %c0_57], %139 {strides = array<i32>} : memref<2x16x128xf32, #tpu.memory_space<vmem>>, vector<2x16x128xf32>,
    return
  }
  func.func @transform_0(%arg0: i32) -> (i32, i32, i32) {
    %c0_i32 = arith.constant 0 : i32
    %c0_i32_0 = arith.constant 0 : i32
    %c0_i32_1 = arith.constant 0 : i32
    %c0_i32_2 = arith.constant 0 : i32
    return %c0_i32, %c0_i32_0, %c0_i32_1 : i32, i32, i32
  }
  func.func @transform_1(%arg0: i32) -> (i32, i32) {
    %c0_i32 = arith.constant 0 : i32
    %c0_i32_0 = arith.constant 0 : i32
    %c0_i32_1 = arith.constant 0 : i32
    return %c0_i32, %c0_i32_0 : i32, i32
  }
  func.func @transform_2(%arg0: i32) -> (i32, i32) {
    %c0_i32 = arith.constant 0 : i32
    %c0_i32_0 = arith.constant 0 : i32
    %c0_i32_1 = arith.constant 0 : i32
    return %c0_i32, %c0_i32_0 : i32, i32
  }
  func.func @transform_3(%arg0: i32) -> (i32, i32, i32) {
    %c0_i32 = arith.constant 0 : i32
    %c0_i32_0 = arith.constant 0 : i32
    %c0_i32_1 = arith.constant 0 : i32
    %c0_i32_2 = arith.constant 0 : i32
    return %c0_i32, %c0_i32_0, %c0_i32_1 : i32, i32, i32
  }
  func.func @transform_4(%arg0: i32) -> (i32, i32, i32) {
    %c0_i32 = arith.constant 0 : i32
    %c0_i32_0 = arith.constant 0 : i32
    %c0_i32_1 = arith.constant 0 : i32
    %c0_i32_2 = arith.constant 0 : i32
    return %c0_i32, %c0_i32_0, %c0_i32_1 : i32, i32, i32
  }
  func.func @transform_5(%arg0: i32) -> (i32, i32, i32) {
    %c0_i32 = arith.constant 0 : i32
    %c0_i32_0 = arith.constant 0 : i32
    %c0_i32_1 = arith.constant 0 : i32
    %c0_i32_2 = arith.constant 0 : i32
    return %c0_i32, %c0_i32_0, %c0_i32_1 : i32, i32, i32
  }
  func.func @transform_6(%arg0: i32) -> (i32, i32, i32) {
    %c0_i32 = arith.constant 0 : i32
    %c0_i32_0 = arith.constant 0 : i32
    %c0_i32_1 = arith.constant 0 : i32
    %c0_i32_2 = arith.constant 0 : i32
    return %c0_i32, %c0_i32_0, %c0_i32_1 : i32, i32, i32
  }
  func.func @transform_7(%arg0: i32) -> (i32, i32) {
    %c0_i32 = arith.constant 0 : i32
    %c0_i32_0 = arith.constant 0 : i32
    %c0_i32_1 = arith.constant 0 : i32
    return %c0_i32, %c0_i32_0 : i32, i32
  }
  func.func @transform_8(%arg0: i32) -> (i32, i32) {
    %c0_i32 = arith.constant 0 : i32
    %c0_i32_0 = arith.constant 0 : i32
    %c0_i32_1 = arith.constant 0 : i32
    return %c0_i32, %c0_i32_0 : i32, i32
  }
  func.func @transform_9(%arg0: i32) -> (i32, i32) {
    %c0_i32 = arith.constant 0 : i32
    %c0_i32_0 = arith.constant 0 : i32
    %c0_i32_1 = arith.constant 0 : i32
    return %c0_i32, %c0_i32_0 : i32, i32
  }
  func.func @transform_10(%arg0: i32) -> (i32, i32) {
    %c0_i32 = arith.constant 0 : i32
    %c0_i32_0 = arith.constant 0 : i32
    %c0_i32_1 = arith.constant 0 : i32
    return %c0_i32, %c0_i32_0 : i32, i32
  }
  func.func @transform_11(%arg0: i32) -> (i32, i32) {
    %c0_i32 = arith.constant 0 : i32
    %c0_i32_0 = arith.constant 0 : i32
    %c0_i32_1 = arith.constant 0 : i32
    return %c0_i32, %c0_i32_0 : i32, i32
  }
  func.func @transform_12(%arg0: i32) -> (i32, i32) {
    %c0_i32 = arith.constant 0 : i32
    %c0_i32_0 = arith.constant 0 : i32
    %c0_i32_1 = arith.constant 0 : i32
    return %c0_i32, %c0_i32_0 : i32, i32
  }
  func.func @transform_13(%arg0: i32) -> (i32, i32) {
    %c0_i32 = arith.constant 0 : i32
    %c0_i32_0 = arith.constant 0 : i32
    %c0_i32_1 = arith.constant 0 : i32
    return %c0_i32, %c0_i32_0 : i32, i32
  }
  func.func @transform_14(%arg0: i32) -> (i32, i32, i32) {
    %c0_i32 = arith.constant 0 : i32
    %c0_i32_0 = arith.constant 0 : i32
    %c0_i32_1 = arith.constant 0 : i32
    %c0_i32_2 = arith.constant 0 : i32
    return %c0_i32, %c0_i32_0, %c0_i32_1 : i32, i32, i32
  }
}

</mosaic_0001>

<bundles_post_ra>
// kernel: tpu_custom_call.1
= control target key start
LH: loop header
LB: loop body
LE: loop exit
PB: predicated region body
PF: predicated region fallthrough
CT: control target
= control target key end

     0   :  { %v5618_v6 = vmov 0.0   ;;  %s7375_s0 = inlined_call_operand.vmem [shape: f32[2,16,128], index: 0, kind: input, shape index: {}]   ;;  %s7376_s1 = inlined_call_operand.vmem [shape: f32[1,128], index: 1, kind: input, shape index: {}]   ;;  %s7377_s2 = inlined_call_operand.vmem [shape: f32[1,128], index: 2, kind: input, shape index: {}]   ;;  %s7378_s3 = inlined_call_operand.vmem [shape: bf16[4,128,32], index: 3, kind: input, shape index: {}]   ;;  %s7379_s4 = inlined_call_operand.vmem [shape: bf16[4,128,32], index: 4, kind: input, shape index: {}]   ;;  %s7380_s5 = inlined_call_operand.vmem [shape: bf16[4,128,32], index: 5, kind: input, shape index: {}]   ;;  %s7381_s6 = inlined_call_operand.vmem [shape: bf16[4,32,128], index: 6, kind: input, shape index: {}]   ;;  %s7382_s7 = inlined_call_operand.vmem [shape: f32[1,128], index: 7, kind: input, shape index: {}]   ;;  %s7383_s8 = inlined_call_operand.vmem [shape: f32[1,128], index: 8, kind: input, shape index: {}]   ;;  %s7384_s9 = inlined_call_operand.vmem [shape: f32[1,128], index: 9, kind: input, shape index: {}]   ;;  %s7385_s10 = inlined_call_operand.vmem [shape: bf16[128,512], index: 10, kind: input, shape index: {}]   ;;  %s7386_s11 = inlined_call_operand.vmem [shape: f32[1,512], index: 11, kind: input, shape index: {}]   ;;  %s7387_s12 = inlined_call_operand.vmem [shape: bf16[512,128], index: 12, kind: input, shape index: {}]   ;;  %s7388_s13 = inlined_call_operand.vmem [shape: f32[1,128], index: 13, kind: input, shape index: {}]   ;;  %s7389_s14 = inlined_call_operand.hbm [shape: f32[2,16,128], index: 14, kind: output, shape index: {}]  }
   0x1   :  { %v49_v0 = vld [vmem:[%s7375_s0] sm:$0xff]  ;;  %v51_v1 = vld [vmem:[%s7375_s0 + $0x10] sm:$0xff]  ;;  %v50_v2 = vld [vmem:[%s7375_s0 + $0x8] sm:$0xff]  ;;  %4650 = vmatprep.subr.bf16.mxu0 %v5618_v6  ;;  %4670 = vmatprep.subr.bf16.mxu1 %v5618_v6 }
   0x2   :  { %55 = vadd.xlane.f32.xlu0 %v49_v0  ;;  %59 = vadd.xlane.f32.xlu1 %v51_v1  ;;  %v52_v3 = vld [vmem:[%s7375_s0 + $0x18] sm:$0xff] }
   0x3   :  { %v5714_v4 = vld [vmem:[%s7378_s3 + $0x38] sm:$0xff]  }
   0x4   :  { %v5719_v5 = vld [vmem:[%s7378_s3 + $0x78] sm:$0xff]   ;;  %4651 = vmatpush3.bf16.msra.mxu0 %v5714_v4 }
   0x5   :  { %4671 = vmatpush3.bf16.msra.mxu1 %v5719_v5  ;;  %4652 = vmatprep.subr.bf16.mxu0 %v5618_v6 }
   0x6   :  { %57 = vadd.xlane.f32.xlu0 %v50_v2  ;;  %61 = vadd.xlane.f32.xlu1 %v52_v3 }
   0x7   :  { %4672 = vmatprep.subr.bf16.mxu1 %v5618_v6 }
   0x8   :  { %19 = vsyncpa [#allocation3], 0  ;;  %v5746_v23 = vld [vmem:[%s7378_s3 + $0x30] sm:$0xff]   ;;  %v5760_v25 = vld [vmem:[%s7378_s3 + $0x28] sm:$0xff]   ;;  %vm5619_vm0 = vmmov 0   ;;  %vm1898_vm1 = vcmask 261120  }
   0x9   :  { %v5751_v24 = vld [vmem:[%s7378_s3 + $0x70] sm:$0xff]   ;;  %4653 = vmatpush3.bf16.msra.mxu0 %v5746_v23  ;;  %v5765_v26 = vld [vmem:[%s7378_s3 + $0x68] sm:$0xff]   ;;  %v5774_v27 = vld [vmem:[%s7378_s3 + $0x20] sm:$0xff]   ;;  %4666 = vmatprep.mubr.msk.bf16.mxu0 %vm5619_vm0, %v5618_v6  ;;  %vm2275_vm2 = vcmask 130048  }
   0xa   :  { %4673 = vmatpush3.bf16.msra.mxu1 %v5751_v24  ;;  %4654 = vmatprep.subr.bf16.mxu0 %v5618_v6  ;;  %v5779_v28 = vld [vmem:[%s7378_s3 + $0x60] sm:$0xff]   ;;  %v5788_v29 = vld [vmem:[%s7378_s3 + $0x18] sm:$0xff]   ;;  %v5802_v31 = vld [vmem:[%s7378_s3 + $0x10] sm:$0xff]  }
   0xb   :  { %4674 = vmatprep.subr.bf16.mxu1 %v5618_v6  ;;  %v5793_v30 = vld [vmem:[%s7378_s3 + $0x58] sm:$0xff]   ;;  %v5807_v32 = vld [vmem:[%s7378_s3 + $0x50] sm:$0xff]   ;;  %v5816_v33 = vld [vmem:[%s7378_s3 + $0x8] sm:$0xff]   ;;  %4686 = vmatprep.mubr.msk.bf16.mxu1 %vm5619_vm0, %v5618_v6 }
   0xc   :  { %v5821_v34 = vld [vmem:[%s7378_s3 + $0x48] sm:$0xff]   ;;  %v5830_v35 = vld [vmem:[%s7378_s3] sm:$0xff]  }
   0xd   :  { %4655 = vmatpush3.bf16.msra.mxu0 %v5760_v25  ;;  %v5835_v36 = vld [vmem:[%s7378_s3 + $0x40] sm:$0xff]  }
   0xe   :  { %4675 = vmatpush3.bf16.msra.mxu1 %v5765_v26  ;;  %4656 = vmatprep.subr.bf16.mxu0 %v5618_v6  ;;  %v4124_v51 = vld [vmem:[%s7376_s1] ss:$0 sm:$0xff] }
   0xf   :  { %4676 = vmatprep.subr.bf16.mxu1 %v5618_v6  ;;  %v4125_v56 = vld [vmem:[%s7377_s2] ss:$0 sm:$0xff] }
  0x11   :  { %4657 = vmatpush3.bf16.msra.mxu0 %v5774_v27 }
  0x12   :  { %4677 = vmatpush3.bf16.msra.mxu1 %v5779_v28  ;;  %4658 = vmatprep.subr.bf16.mxu0 %v5618_v6 }
  0x13   :  { %4678 = vmatprep.subr.bf16.mxu1 %v5618_v6 }
  0x15   :  { %4659 = vmatpush3.bf16.msra.mxu0 %v5788_v29 }
  0x16   :  { %4679 = vmatpush3.bf16.msra.mxu1 %v5793_v30  ;;  %4660 = vmatprep.subr.bf16.mxu0 %v5618_v6 }
  0x17   :  { %4680 = vmatprep.subr.bf16.mxu1 %v5618_v6 }
  0x19   :  { %4661 = vmatpush3.bf16.msra.mxu0 %v5802_v31 }
  0x1a   :  { %4681 = vmatpush3.bf16.msra.mxu1 %v5807_v32  ;;  %4662 = vmatprep.subr.bf16.mxu0 %v5618_v6 }
  0x1b   :  { %4682 = vmatprep.subr.bf16.mxu1 %v5618_v6 }
  0x1d   :  { %4663 = vmatpush3.bf16.msra.mxu0 %v5816_v33 }
  0x1e   :  { %4683 = vmatpush3.bf16.msra.mxu1 %v5821_v34  ;;  %4664 = vmatprep.subr.bf16.mxu0 %v5618_v6 }
  0x1f   :  { %4684 = vmatprep.subr.bf16.mxu1 %v5618_v6 }
  0x21   :  { %4665 = vmatpush3.bf16.msra.mxu0 %v5830_v35 }
  0x22   :  { %4685 = vmatpush3.bf16.msra.mxu1 %v5835_v36  ;;  %4690 = vmatprep.subr.bf16.mxu0 %v5618_v6 }
  0x23   :  { %4710 = vmatprep.subr.bf16.mxu1 %v5618_v6 }
  0x8b   :  { %v56_v7 = vpop.xlane.xlu0 %55  ;;  %v60_v8 = vpop.xlane.xlu1 %59 }
  0x8c   :  { %v64_v9 = vmul.f32 0.0078125, %v56_v7  ;;  %v66_v10 = vmul.f32 0.0078125, %v60_v8 }
  0x8e   :  { %v5727_v11 = vsub.f32 %v49_v0, %v64_v9  ;;  %v5729_v12 = vsub.f32 %v51_v1, %v66_v10  ;;  %v5858_v1 = vld [vmem:[%s7378_s3 + $0xb8] sm:$0xff]   ;;  %v5874_v9 = vld [vmem:[%s7378_s3 + $0xb0] sm:$0xff]  }
  0x8f   :  { %v58_v13 = vpop.xlane.xlu0 %57  ;;  %v62_v14 = vpop.xlane.xlu1 %61  ;;  %v5879_v10 = vld [vmem:[%s7378_s3 + $0xf0] sm:$0xff]  }
  0x90   :  { %v65_v15 = vmul.f32 0.0078125, %v58_v13  ;;  %v72_v16 = vmul.f32 %v5727_v11, %v5727_v11  ;;  %v67_v17 = vmul.f32 0.0078125, %v62_v14  ;;  %v74_v20 = vmul.f32 %v5729_v12, %v5729_v12  ;;  %v5899_v13 = vld [vmem:[%s7378_s3 + $0xe8] sm:$0xff]   ;;  %v5908_v14 = vld [vmem:[%s7378_s3 + $0xa0] sm:$0xff]  }
  0x92   :  { %v5733_v18 = vsub.f32 %v50_v2, %v65_v15  ;;  %76 = vadd.xlane.f32.xlu0 %v72_v16  ;;  %v5735_v19 = vsub.f32 %v52_v3, %v67_v17  ;;  %v5863_v2 = vld [vmem:[%s7378_s3 + $0xf8] sm:$0xff]   ;;  %v5913_v15 = vld [vmem:[%s7378_s3 + $0xe0] sm:$0xff]  }
  0x93   :  { %v5922_v16 = vld [vmem:[%s7378_s3 + $0x98] sm:$0xff]  }
  0x94   :  { %v73_v21 = vmul.f32 %v5733_v18, %v5733_v18  ;;  %v75_v22 = vmul.f32 %v5735_v19, %v5735_v19  ;;  %v5927_v17 = vld [vmem:[%s7378_s3 + $0xd8] sm:$0xff]  }
  0x96   :  { %80 = vadd.xlane.f32.xlu0 %v74_v20  ;;  %78 = vadd.xlane.f32.xlu1 %v73_v21  ;;  %v5950_v20 = vld [vmem:[%s7378_s3 + $0x88] sm:$0xff]  }
  0x97   :  { %v5955_v21 = vld [vmem:[%s7378_s3 + $0xc8] sm:$0xff]  }
  0x9a   :  { %82 = vadd.xlane.f32.xlu1 %v75_v22  ;;  %v5964_v22 = vld [vmem:[%s7378_s3 + $0x80] sm:$0xff]  }
 0x11b   :  { %v77_v37 = vpop.xlane.xlu0 %76 }
 0x11c   :  { %v84_v38 = vmul.f32 0.0078125, %v77_v37  ;;  %v5969_v37 = vld [vmem:[%s7378_s3 + $0xc0] sm:$0xff]  }
 0x11e   :  { %v88_v39 = vadd.f32 1e-05, %v84_v38  ;;  %v6172_v38 = vld [vmem:[%s7379_s4 + $0xb8] sm:$0xff]  }
 0x11f   :  { %v79_v40 = vpop.xlane.xlu1 %78  ;;  %v81_v41 = vpop.xlane.xlu0 %80 }
 0x120   :  { %5480 = vrsqrt.f32 %v88_v39  ;;  %v85_v42 = vmul.f32 0.0078125, %v79_v40  ;;  %v86_v43 = vmul.f32 0.0078125, %v81_v41  ;;  %v6177_v39 = vld [vmem:[%s7379_s4 + $0xf8] sm:$0xff]   ;;  %v6188_v40 = vld [vmem:[%s7379_s4 + $0xb0] sm:$0xff]  }
 0x121   :  { %v6193_v41 = vld [vmem:[%s7379_s4 + $0xf0] sm:$0xff]  }
 0x122   :  { %v89_v44 = vadd.f32 1e-05, %v85_v42  ;;  %v90_v45 = vadd.f32 1e-05, %v86_v43  ;;  %v6206_v42 = vld [vmem:[%s7379_s4 + $0xa8] sm:$0xff]  }
 0x123   :  { %v83_v46 = vpop.xlane.xlu1 %82  ;;  %v6211_v43 = vld [vmem:[%s7379_s4 + $0xe8] sm:$0xff]  }
 0x124   :  { %5482 = vrsqrt.f32 %v89_v44  ;;  %v87_v47 = vmul.f32 0.0078125, %v83_v46  ;;  %v6220_v44 = vld [vmem:[%s7379_s4 + $0xa0] sm:$0xff]   ;;  %v6234_v46 = vld [vmem:[%s7379_s4 + $0x98] sm:$0xff]  }
 0x125   :  { %5484 = vrsqrt.f32 %v90_v45  ;;  %v6225_v45 = vld [vmem:[%s7379_s4 + $0xe0] sm:$0xff]  }
 0x126   :  { %v91_v48 = vadd.f32 1e-05, %v87_v47  ;;  %v6239_v47 = vld [vmem:[%s7379_s4 + $0xd8] sm:$0xff]  }
 0x128   :  { %5486 = vrsqrt.f32 %v91_v48  ;;  %v6248_v48 = vld [vmem:[%s7379_s4 + $0x90] sm:$0xff]  }
 0x12d   :  { %v5481_v49 = vpop.eup %5480 }
 0x12e   :  { %v96_v50 = vmul.f32 %v5481_v49, %v5727_v11  ;;  %v6253_v49 = vld [vmem:[%s7379_s4 + $0xd0] sm:$0xff]  }
 0x130   :  { %v106_v54 = vmul.f32 %v4124_v51, %v96_v50  ;;  %v6262_v50 = vld [vmem:[%s7379_s4 + $0x88] sm:$0xff]  }
 0x131   :  { %v5483_v52 = vpop.eup %5482 }
 0x132   :  { %v5485_v53 = vpop.eup %5484  ;;  %v97_v55 = vmul.f32 %v5483_v52, %v5733_v18  ;;  %v116_v61 = vadd.f32 %v4125_v56, %v106_v54  ;;  %v5936_v18 = vld [vmem:[%s7378_s3 + $0x90] sm:$0xff]   ;;  %v6276_v52 = vld [vmem:[%s7379_s4 + $0x80] sm:$0xff]  }
 0x133   :  { %v98_v57 = vmul.f32 %v5485_v53, %v5729_v12  ;;  %v5894_v12 = vld [vmem:[%s7378_s3 + $0xa8] sm:$0xff]   ;;  %v6281_v53 = vld [vmem:[%s7379_s4 + $0xc0] sm:$0xff]  }
 0x134   :  { %v107_v58 = vmul.f32 %v4124_v51, %v97_v55 }
 0x135   :  { %v5487_v59 = vpop.eup %5486  ;;  %v108_v60 = vmul.f32 %v4124_v51, %v98_v57 }
 0x136   :  { %v117_v62 = vadd.f32 %v4125_v56, %v107_v58  ;;  %v99_v63 = vmul.f32 %v5487_v59, %v5735_v19  ;;  %v5941_v19 = vld [vmem:[%s7378_s3 + $0xd0] sm:$0xff]  }
 0x137   :  { %v118_v0 = vadd.f32 %v4125_v56, %v108_v60 }
 0x138   :  { %v5865_v3 = vpack.c.bf16 %v117_v62, %v116_v61  ;;  %v109_v7 = vmul.f32 %v4124_v51, %v99_v63  ;;  %v6267_v51 = vld [vmem:[%s7379_s4 + $0xc8] sm:$0xff]  }
 0x13a   :  { %v119_v8 = vadd.f32 %v4125_v56, %v109_v7  ;;  %4667 = vmatmul.mubr.bf16.vlgmr.msra.gmra.mxu0 %v5865_v3  ;;  %4687 = vmatmul.mubr.bf16.vlgmr.msra.gmra.mxu1 %v5865_v3 }
 0x13b   :  { %4691 = vmatpush3.bf16.msra.mxu0 %v5858_v1  ;;  %4711 = vmatpush3.bf16.msra.mxu1 %v5863_v2 }
 0x13c   :  { %v5881_v11 = vpack.c.bf16 %v119_v8, %v118_v0  ;;  %4692 = vmatprep.subr.bf16.mxu0 %v5618_v6  ;;  %4712 = vmatprep.subr.bf16.mxu1 %v5618_v6  ;;  %v6378_v0 = vld [vmem:[%s7380_s5 + $0x38] sm:$0xff]   ;;  %v6398_v8 = vld [vmem:[%s7380_s5 + $0x30] sm:$0xff]  }
 0x13d   :  { %4706 = vmatprep.mubr.msk.bf16.mxu0 %vm5619_vm0, %v5618_v6  ;;  %4726 = vmatprep.mubr.msk.bf16.mxu1 %vm5619_vm0, %v5618_v6 }
 0x13f   :  { %4693 = vmatpush3.bf16.msra.mxu0 %v5874_v9  ;;  %4713 = vmatpush3.bf16.msra.mxu1 %v5879_v10 }
 0x140   :  { %4694 = vmatprep.subr.bf16.mxu0 %v5618_v6  ;;  %4714 = vmatprep.subr.bf16.mxu1 %v5618_v6 }
 0x143   :  { %4695 = vmatpush3.bf16.msra.mxu0 %v5894_v12  ;;  %4715 = vmatpush3.bf16.msra.mxu1 %v5899_v13 }
 0x144   :  { %4696 = vmatprep.subr.bf16.mxu0 %v5618_v6  ;;  %4716 = vmatprep.subr.bf16.mxu1 %v5618_v6 }
 0x147   :  { %4697 = vmatpush3.bf16.msra.mxu0 %v5908_v14  ;;  %4717 = vmatpush3.bf16.msra.mxu1 %v5913_v15 }
 0x148   :  { %4698 = vmatprep.subr.bf16.mxu0 %v5618_v6  ;;  %4718 = vmatprep.subr.bf16.mxu1 %v5618_v6 }
 0x14b   :  { %4699 = vmatpush3.bf16.msra.mxu0 %v5922_v16  ;;  %4719 = vmatpush3.bf16.msra.mxu1 %v5927_v17 }
 0x14c   :  { %4700 = vmatprep.subr.bf16.mxu0 %v5618_v6  ;;  %4720 = vmatprep.subr.bf16.mxu1 %v5618_v6 }
 0x14f   :  { %4701 = vmatpush3.bf16.msra.mxu0 %v5936_v18  ;;  %4721 = vmatpush3.bf16.msra.mxu1 %v5941_v19 }
 0x150   :  { %4702 = vmatprep.subr.bf16.mxu0 %v5618_v6  ;;  %4722 = vmatprep.subr.bf16.mxu1 %v5618_v6 }
 0x153   :  { %4703 = vmatpush3.bf16.msra.mxu0 %v5950_v20  ;;  %4723 = vmatpush3.bf16.msra.mxu1 %v5955_v21 }
 0x154   :  { %4704 = vmatprep.subr.bf16.mxu0 %v5618_v6  ;;  %4724 = vmatprep.subr.bf16.mxu1 %v5618_v6 }
 0x157   :  { %4705 = vmatpush3.bf16.msra.mxu0 %v5964_v22  ;;  %4725 = vmatpush3.bf16.msra.mxu1 %v5969_v37 }
 0x158   :  { %4730 = vmatprep.subr.bf16.mxu0 %v5618_v6  ;;  %4750 = vmatprep.subr.bf16.mxu1 %v5618_v6 }
 0x15a   :  { %4707 = vmatmul.mubr.bf16.vlgmr.msra.gmra.mxu0 %v5865_v3  ;;  %4727 = vmatmul.mubr.bf16.vlgmr.msra.gmra.mxu1 %v5865_v3 }
 0x15b   :  { %4731 = vmatpush3.bf16.msra.mxu0 %v5714_v4  ;;  %4751 = vmatpush3.bf16.msra.mxu1 %v5719_v5  ;;  %v6054_v4 = vld [vmem:[%s7379_s4 + $0x38] sm:$0xff]  }
 0x15c   :  { %4732 = vmatprep.subr.bf16.mxu0 %v5618_v6  ;;  %4752 = vmatprep.subr.bf16.mxu1 %v5618_v6  ;;  %v6059_v5 = vld [vmem:[%s7379_s4 + $0x78] sm:$0xff]  }
 0x15d   :  { %4746 = vmatprep.mubr.msk.bf16.mxu0 %vm5619_vm0, %v5618_v6  ;;  %4766 = vmatprep.mubr.msk.bf16.mxu1 %vm5619_vm0, %v5618_v6 }
 0x15f   :  { %4733 = vmatpush3.bf16.msra.mxu0 %v5746_v23  ;;  %4753 = vmatpush3.bf16.msra.mxu1 %v5751_v24  ;;  %v6070_v23 = vld [vmem:[%s7379_s4 + $0x30] sm:$0xff]  }
 0x160   :  { %4734 = vmatprep.subr.bf16.mxu0 %v5618_v6  ;;  %4754 = vmatprep.subr.bf16.mxu1 %v5618_v6  ;;  %v6075_v24 = vld [vmem:[%s7379_s4 + $0x70] sm:$0xff]  }
 0x163   :  { %4735 = vmatpush3.bf16.msra.mxu0 %v5760_v25  ;;  %4755 = vmatpush3.bf16.msra.mxu1 %v5765_v26  ;;  %v6088_v25 = vld [vmem:[%s7379_s4 + $0x28] sm:$0xff]  }
 0x164   :  { %4736 = vmatprep.subr.bf16.mxu0 %v5618_v6  ;;  %4756 = vmatprep.subr.bf16.mxu1 %v5618_v6  ;;  %v6093_v26 = vld [vmem:[%s7379_s4 + $0x68] sm:$0xff]  }
 0x167   :  { %4737 = vmatpush3.bf16.msra.mxu0 %v5774_v27  ;;  %4757 = vmatpush3.bf16.msra.mxu1 %v5779_v28  ;;  %v6102_v27 = vld [vmem:[%s7379_s4 + $0x20] sm:$0xff]  }
 0x168   :  { %4738 = vmatprep.subr.bf16.mxu0 %v5618_v6  ;;  %4758 = vmatprep.subr.bf16.mxu1 %v5618_v6  ;;  %v6107_v28 = vld [vmem:[%s7379_s4 + $0x60] sm:$0xff]  }
 0x16b   :  { %4739 = vmatpush3.bf16.msra.mxu0 %v5788_v29  ;;  %4759 = vmatpush3.bf16.msra.mxu1 %v5793_v30  ;;  %v6116_v29 = vld [vmem:[%s7379_s4 + $0x18] sm:$0xff]  }
 0x16c   :  { %4740 = vmatprep.subr.bf16.mxu0 %v5618_v6  ;;  %4760 = vmatprep.subr.bf16.mxu1 %v5618_v6  ;;  %v6121_v30 = vld [vmem:[%s7379_s4 + $0x58] sm:$0xff]  }
 0x16f   :  { %4741 = vmatpush3.bf16.msra.mxu0 %v5802_v31  ;;  %4761 = vmatpush3.bf16.msra.mxu1 %v5807_v32  ;;  %v6130_v31 = vld [vmem:[%s7379_s4 + $0x10] sm:$0xff]  }
 0x170   :  { %4742 = vmatprep.subr.bf16.mxu0 %v5618_v6  ;;  %4762 = vmatprep.subr.bf16.mxu1 %v5618_v6  ;;  %v6135_v32 = vld [vmem:[%s7379_s4 + $0x50] sm:$0xff]  }
 0x173   :  { %4743 = vmatpush3.bf16.msra.mxu0 %v5816_v33  ;;  %4763 = vmatpush3.bf16.msra.mxu1 %v5821_v34  ;;  %v6144_v33 = vld [vmem:[%s7379_s4 + $0x8] sm:$0xff]  }
 0x174   :  { %4744 = vmatprep.subr.bf16.mxu0 %v5618_v6  ;;  %4764 = vmatprep.subr.bf16.mxu1 %v5618_v6  ;;  %v6149_v34 = vld [vmem:[%s7379_s4 + $0x48] sm:$0xff]  }
 0x177   :  { %4745 = vmatpush3.bf16.msra.mxu0 %v5830_v35  ;;  %4765 = vmatpush3.bf16.msra.mxu1 %v5835_v36  ;;  %v6158_v35 = vld [vmem:[%s7379_s4] sm:$0xff]  }
 0x178   :  { %4770 = vmatprep.subr.bf16.mxu0 %v5618_v6  ;;  %4790 = vmatprep.subr.bf16.mxu1 %v5618_v6  ;;  %v6163_v36 = vld [vmem:[%s7379_s4 + $0x40] sm:$0xff]  }
 0x17a   :  { %4747 = vmatmul.mubr.bf16.vlgmr.msra.gmra.mxu0 %v5881_v11  ;;  %4767 = vmatmul.mubr.bf16.vlgmr.msra.gmra.mxu1 %v5881_v11 }
 0x17b   :  { %4771 = vmatpush3.bf16.msra.mxu0 %v5858_v1  ;;  %4791 = vmatpush3.bf16.msra.mxu1 %v5863_v2  ;;  %v6383_v1 = vld [vmem:[%s7380_s5 + $0x78] sm:$0xff]  }
 0x17c   :  { %4772 = vmatprep.subr.bf16.mxu0 %v5618_v6  ;;  %4792 = vmatprep.subr.bf16.mxu1 %v5618_v6 }
 0x17d   :  { %4786 = vmatprep.mubr.msk.bf16.mxu0 %vm5619_vm0, %v5618_v6  ;;  %4806 = vmatprep.mubr.msk.bf16.mxu1 %vm5619_vm0, %v5618_v6 }
 0x17f   :  { %4773 = vmatpush3.bf16.msra.mxu0 %v5874_v9  ;;  %4793 = vmatpush3.bf16.msra.mxu1 %v5879_v10  ;;  %v6403_v9 = vld [vmem:[%s7380_s5 + $0x70] sm:$0xff]  }
 0x180   :  { %4774 = vmatprep.subr.bf16.mxu0 %v5618_v6  ;;  %4794 = vmatprep.subr.bf16.mxu1 %v5618_v6 }
 0x183   :  { %4775 = vmatpush3.bf16.msra.mxu0 %v5894_v12  ;;  %4795 = vmatpush3.bf16.msra.mxu1 %v5899_v13 }
 0x184   :  { %4776 = vmatprep.subr.bf16.mxu0 %v5618_v6  ;;  %4796 = vmatprep.subr.bf16.mxu1 %v5618_v6 }
 0x187   :  { %4777 = vmatpush3.bf16.msra.mxu0 %v5908_v14  ;;  %4797 = vmatpush3.bf16.msra.mxu1 %v5913_v15 }
 0x188   :  { %4778 = vmatprep.subr.bf16.mxu0 %v5618_v6  ;;  %4798 = vmatprep.subr.bf16.mxu1 %v5618_v6 }
 0x18b   :  { %4779 = vmatpush3.bf16.msra.mxu0 %v5922_v16  ;;  %4799 = vmatpush3.bf16.msra.mxu1 %v5927_v17  ;;  %v6424_v17 = vld [vmem:[%s7380_s5 + $0x28] sm:$0xff]  }
 0x18c   :  { %4780 = vmatprep.subr.bf16.mxu0 %v5618_v6  ;;  %4800 = vmatprep.subr.bf16.mxu1 %v5618_v6 }
 0x18f   :  { %4781 = vmatpush3.bf16.msra.mxu0 %v5936_v18  ;;  %4801 = vmatpush3.bf16.msra.mxu1 %v5941_v19  ;;  %v6429_v18 = vld [vmem:[%s7380_s5 + $0x68] sm:$0xff]  }
 0x190   :  { %4782 = vmatprep.subr.bf16.mxu0 %v5618_v6  ;;  %4802 = vmatprep.subr.bf16.mxu1 %v5618_v6 }
 0x193   :  { %4783 = vmatpush3.bf16.msra.mxu0 %v5950_v20  ;;  %4803 = vmatpush3.bf16.msra.mxu1 %v5955_v21  ;;  %v6438_v21 = vld [vmem:[%s7380_s5 + $0x20] sm:$0xff]  }
 0x194   :  { %4784 = vmatprep.subr.bf16.mxu0 %v5618_v6  ;;  %4804 = vmatprep.subr.bf16.mxu1 %v5618_v6 }
 0x197   :  { %4785 = vmatpush3.bf16.msra.mxu0 %v5964_v22  ;;  %4805 = vmatpush3.bf16.msra.mxu1 %v5969_v37  ;;  %v6443_v22 = vld [vmem:[%s7380_s5 + $0x60] sm:$0xff]   ;;  %v6452_v37 = vld [vmem:[%s7380_s5 + $0x18] sm:$0xff]  }
 0x198   :  { %4810 = vmatprep.subr.bf16.mxu0 %v5618_v6  ;;  %4830 = vmatprep.subr.bf16.mxu1 %v5618_v6 }
 0x19a   :  { %4787 = vmatmul.mubr.bf16.vlgmr.msra.gmra.mxu0 %v5881_v11  ;;  %4807 = vmatmul.mubr.bf16.vlgmr.msra.gmra.mxu1 %v5881_v11 }
 0x19b   :  { %4811 = vmatpush3.bf16.msra.mxu0 %v6054_v4  ;;  %4831 = vmatpush3.bf16.msra.mxu1 %v6059_v5 }
 0x19c   :  { %4812 = vmatprep.subr.bf16.mxu0 %v5618_v6  ;;  %4832 = vmatprep.subr.bf16.mxu1 %v5618_v6 }
 0x19d   :  { %4826 = vmatprep.mubr.msk.bf16.mxu0 %vm5619_vm0, %v5618_v6  ;;  %4846 = vmatprep.mubr.msk.bf16.mxu1 %vm5619_vm0, %v5618_v6 }
 0x19f   :  { %4813 = vmatpush3.bf16.msra.mxu0 %v6070_v23  ;;  %4833 = vmatpush3.bf16.msra.mxu1 %v6075_v24 }
 0x1a0   :  { %4814 = vmatprep.subr.bf16.mxu0 %v5618_v6  ;;  %4834 = vmatprep.subr.bf16.mxu1 %v5618_v6 }
 0x1a3   :  { %4815 = vmatpush3.bf16.msra.mxu0 %v6088_v25  ;;  %4835 = vmatpush3.bf16.msra.mxu1 %v6093_v26 }
 0x1a4   :  { %4816 = vmatprep.subr.bf16.mxu0 %v5618_v6  ;;  %4836 = vmatprep.subr.bf16.mxu1 %v5618_v6 }
 0x1a7   :  { %4817 = vmatpush3.bf16.msra.mxu0 %v6102_v27  ;;  %4837 = vmatpush3.bf16.msra.mxu1 %v6107_v28 }
 0x1a8   :  { %4818 = vmatprep.subr.bf16.mxu0 %v5618_v6  ;;  %4838 = vmatprep.subr.bf16.mxu1 %v5618_v6 }
 0x1ab   :  { %4819 = vmatpush3.bf16.msra.mxu0 %v6116_v29  ;;  %4839 = vmatpush3.bf16.msra.mxu1 %v6121_v30 }
 0x1ac   :  { %4820 = vmatprep.subr.bf16.mxu0 %v5618_v6  ;;  %4840 = vmatprep.subr.bf16.mxu1 %v5618_v6 }
 0x1af   :  { %4821 = vmatpush3.bf16.msra.mxu0 %v6130_v31  ;;  %4841 = vmatpush3.bf16.msra.mxu1 %v6135_v32 }
 0x1b0   :  { %4822 = vmatprep.subr.bf16.mxu0 %v5618_v6  ;;  %4842 = vmatprep.subr.bf16.mxu1 %v5618_v6 }
 0x1b3   :  { %4823 = vmatpush3.bf16.msra.mxu0 %v6144_v33  ;;  %4843 = vmatpush3.bf16.msra.mxu1 %v6149_v34 }
 0x1b4   :  { %4824 = vmatprep.subr.bf16.mxu0 %v5618_v6  ;;  %4844 = vmatprep.subr.bf16.mxu1 %v5618_v6 }
 0x1b7   :  { %4825 = vmatpush3.bf16.msra.mxu0 %v6158_v35  ;;  %4845 = vmatpush3.bf16.msra.mxu1 %v6163_v36 }
 0x1b8   :  { %4850 = vmatprep.subr.bf16.mxu0 %v5618_v6  ;;  %4870 = vmatprep.subr.bf16.mxu1 %v5618_v6 }
 0x1ba   :  { %4827 = vmatmul.mubr.bf16.vlgmr.msra.gmra.mxu0 %v5865_v3  ;;  %4847 = vmatmul.mubr.bf16.vlgmr.msra.gmra.mxu1 %v5865_v3 }
 0x1bb   :  { %4851 = vmatpush3.bf16.msra.mxu0 %v6172_v38  ;;  %4871 = vmatpush3.bf16.msra.mxu1 %v6177_v39 }
 0x1bc   :  { %4852 = vmatprep.subr.bf16.mxu0 %v5618_v6  ;;  %4872 = vmatprep.subr.bf16.mxu1 %v5618_v6 }
 0x1bd   :  { %4866 = vmatprep.mubr.msk.bf16.mxu0 %vm5619_vm0, %v5618_v6  ;;  %4886 = vmatprep.mubr.msk.bf16.mxu1 %vm5619_vm0, %v5618_v6 }
 0x1bf   :  { %4853 = vmatpush3.bf16.msra.mxu0 %v6188_v40  ;;  %4873 = vmatpush3.bf16.msra.mxu1 %v6193_v41 }
 0x1c0   :  { %4854 = vmatprep.subr.bf16.mxu0 %v5618_v6  ;;  %4874 = vmatprep.subr.bf16.mxu1 %v5618_v6 }
 0x1c3   :  { %4855 = vmatpush3.bf16.msra.mxu0 %v6206_v42  ;;  %4875 = vmatpush3.bf16.msra.mxu1 %v6211_v43 }
 0x1c4   :  { %4856 = vmatprep.subr.bf16.mxu0 %v5618_v6  ;;  %4876 = vmatprep.subr.bf16.mxu1 %v5618_v6 }
 0x1c7   :  { %4857 = vmatpush3.bf16.msra.mxu0 %v6220_v44  ;;  %4877 = vmatpush3.bf16.msra.mxu1 %v6225_v45 }
 0x1c8   :  { %4858 = vmatprep.subr.bf16.mxu0 %v5618_v6  ;;  %4878 = vmatprep.subr.bf16.mxu1 %v5618_v6 }
 0x1cb   :  { %4859 = vmatpush3.bf16.msra.mxu0 %v6234_v46  ;;  %4879 = vmatpush3.bf16.msra.mxu1 %v6239_v47 }
 0x1cc   :  { %4860 = vmatprep.subr.bf16.mxu0 %v5618_v6  ;;  %4880 = vmatprep.subr.bf16.mxu1 %v5618_v6 }
 0x1cf   :  { %4861 = vmatpush3.bf16.msra.mxu0 %v6248_v48  ;;  %4881 = vmatpush3.bf16.msra.mxu1 %v6253_v49 }
 0x1d0   :  { %4862 = vmatprep.subr.bf16.mxu0 %v5618_v6  ;;  %4882 = vmatprep.subr.bf16.mxu1 %v5618_v6 }
 0x1d3   :  { %4863 = vmatpush3.bf16.msra.mxu0 %v6262_v50  ;;  %4883 = vmatpush3.bf16.msra.mxu1 %v6267_v51 }
 0x1d4   :  { %4864 = vmatprep.subr.bf16.mxu0 %v5618_v6  ;;  %4884 = vmatprep.subr.bf16.mxu1 %v5618_v6 }
 0x1d7   :  { %4865 = vmatpush3.bf16.msra.mxu0 %v6276_v52  ;;  %4885 = vmatpush3.bf16.msra.mxu1 %v6281_v53 }
 0x1d8   :  { %4890 = vmatprep.subr.bf16.mxu0 %v5618_v6  ;;  %4910 = vmatprep.subr.bf16.mxu1 %v5618_v6 }
 0x1da   :  { %4867 = vmatmul.mubr.bf16.vlgmr.msra.gmra.mxu0 %v5865_v3  ;;  %4887 = vmatmul.mubr.bf16.vlgmr.msra.gmra.mxu1 %v5865_v3 }
 0x1db   :  { %4891 = vmatpush3.bf16.msra.mxu0 %v6054_v4  ;;  %4911 = vmatpush3.bf16.msra.mxu1 %v6059_v5  ;;  %v6457_v4 = vld [vmem:[%s7380_s5 + $0x58] sm:$0xff]   ;;  %v6466_v5 = vld [vmem:[%s7380_s5 + $0x10] sm:$0xff]  }
 0x1dc   :  { %4892 = vmatprep.subr.bf16.mxu0 %v5618_v6  ;;  %4912 = vmatprep.subr.bf16.mxu1 %v5618_v6 }
 0x1dd   :  { %4906 = vmatprep.mubr.msk.bf16.mxu0 %vm5619_vm0, %v5618_v6  ;;  %4926 = vmatprep.mubr.msk.bf16.mxu1 %vm5619_vm0, %v5618_v6 }
 0x1df   :  { %4893 = vmatpush3.bf16.msra.mxu0 %v6070_v23  ;;  %4913 = vmatpush3.bf16.msra.mxu1 %v6075_v24  ;;  %v6471_v23 = vld [vmem:[%s7380_s5 + $0x50] sm:$0xff]   ;;  %v6480_v24 = vld [vmem:[%s7380_s5 + $0x8] sm:$0xff]  }
 0x1e0   :  { %4894 = vmatprep.subr.bf16.mxu0 %v5618_v6  ;;  %4914 = vmatprep.subr.bf16.mxu1 %v5618_v6 }
 0x1e3   :  { %4895 = vmatpush3.bf16.msra.mxu0 %v6088_v25  ;;  %4915 = vmatpush3.bf16.msra.mxu1 %v6093_v26  ;;  %v6485_v25 = vld [vmem:[%s7380_s5 + $0x48] sm:$0xff]   ;;  %v6494_v26 = vld [vmem:[%s7380_s5] sm:$0xff]  }
 0x1e4   :  { %4896 = vmatprep.subr.bf16.mxu0 %v5618_v6  ;;  %4916 = vmatprep.subr.bf16.mxu1 %v5618_v6 }
 0x1e7   :  { %4897 = vmatpush3.bf16.msra.mxu0 %v6102_v27  ;;  %4917 = vmatpush3.bf16.msra.mxu1 %v6107_v28  ;;  %v6499_v27 = vld [vmem:[%s7380_s5 + $0x40] sm:$0xff]   ;;  %v6508_v28 = vld [vmem:[%s7380_s5 + $0xb8] sm:$0xff]  }
 0x1e8   :  { %4898 = vmatprep.subr.bf16.mxu0 %v5618_v6  ;;  %4918 = vmatprep.subr.bf16.mxu1 %v5618_v6 }
 0x1eb   :  { %4899 = vmatpush3.bf16.msra.mxu0 %v6116_v29  ;;  %4919 = vmatpush3.bf16.msra.mxu1 %v6121_v30  ;;  %v6513_v29 = vld [vmem:[%s7380_s5 + $0xf8] sm:$0xff]  }
 0x1ec   :  { %4900 = vmatprep.subr.bf16.mxu0 %v5618_v6  ;;  %4920 = vmatprep.subr.bf16.mxu1 %v5618_v6 }
 0x1ef   :  { %4901 = vmatpush3.bf16.msra.mxu0 %v6130_v31  ;;  %4921 = vmatpush3.bf16.msra.mxu1 %v6135_v32  ;;  %v6528_v32 = vld [vmem:[%s7380_s5 + $0xb0] sm:$0xff]  }
 0x1f0   :  { %4902 = vmatprep.subr.bf16.mxu0 %v5618_v6  ;;  %4922 = vmatprep.subr.bf16.mxu1 %v5618_v6 }
 0x1f3   :  { %4903 = vmatpush3.bf16.msra.mxu0 %v6144_v33  ;;  %4923 = vmatpush3.bf16.msra.mxu1 %v6149_v34  ;;  %v6533_v33 = vld [vmem:[%s7380_s5 + $0xf0] sm:$0xff]  }
 0x1f4   :  { %4904 = vmatprep.subr.bf16.mxu0 %v5618_v6  ;;  %4924 = vmatprep.subr.bf16.mxu1 %v5618_v6 }
 0x1f7   :  { %4905 = vmatpush3.bf16.msra.mxu0 %v6158_v35  ;;  %4925 = vmatpush3.bf16.msra.mxu1 %v6163_v36 }
 0x1f8   :  { %4930 = vmatprep.subr.bf16.mxu0 %v5618_v6  ;;  %4950 = vmatprep.subr.bf16.mxu1 %v5618_v6 }
 0x1fa   :  { %4907 = vmatmul.mubr.bf16.vlgmr.msra.gmra.mxu0 %v5881_v11  ;;  %4927 = vmatmul.mubr.bf16.vlgmr.msra.gmra.mxu1 %v5881_v11  ;;  %v6329_v54 = vpop.f32.mrf.mxu0  ;;  %v6331_v55 = vpop.f32.mrf.mxu1 }
 0x1fb   :  { %4931 = vmatpush3.bf16.msra.mxu0 %v6172_v38  ;;  %4951 = vmatpush3.bf16.msra.mxu1 %v6177_v39 }
 0x1fc   :  { %v4668_v56 = vpop.f32.mrf.mxu0  ;;  %v4688_v57 = vpop.f32.mrf.mxu1  ;;  %4932 = vmatprep.subr.bf16.mxu0 %v5618_v6  ;;  %4952 = vmatprep.subr.bf16.mxu1 %v5618_v6 }
 0x1fd   :  { %4946 = vmatprep.mubr.msk.bf16.mxu0 %vm5619_vm0, %v5618_v6  ;;  %4966 = vmatprep.mubr.msk.bf16.mxu1 %vm5619_vm0, %v5618_v6  ;;  %v6629_v56 = vld [vmem:[%s7380_s5 + $0xc0] sm:$0xff]  }
 0x1fe   :  { %v6341_v58 = vpop.f32.mrf.mxu0  ;;  %v6343_v59 = vpop.f32.mrf.mxu1 }
 0x1ff   :  { %v706_v60 = vpack.c.bf16 %v6341_v58, %v6329_v54  ;;  %v707_v61 = vpack.c.bf16 %v6343_v59, %v6331_v55  ;;  %4933 = vmatpush3.bf16.msra.mxu0 %v6188_v40  ;;  %4953 = vmatpush3.bf16.msra.mxu1 %v6193_v41  ;;  %v6554_v41 = vld [vmem:[%s7380_s5 + $0xa8] sm:$0xff]  }
 0x200   :  { %v4669_v62 = vpop.f32.mrf.mxu0  ;;  %v4689_v63 = vpop.f32.mrf.mxu1  ;;  %4934 = vmatprep.subr.bf16.mxu0 %v5618_v6  ;;  %4954 = vmatprep.subr.bf16.mxu1 %v5618_v6 }
 0x203   :  { %4935 = vmatpush3.bf16.msra.mxu0 %v6206_v42  ;;  %4955 = vmatpush3.bf16.msra.mxu1 %v6211_v43  ;;  %v6559_v42 = vld [vmem:[%s7380_s5 + $0xe8] sm:$0xff]  }
 0x204   :  { %4936 = vmatprep.subr.bf16.mxu0 %v5618_v6  ;;  %4956 = vmatprep.subr.bf16.mxu1 %v5618_v6 }
 0x207   :  { %4937 = vmatpush3.bf16.msra.mxu0 %v6220_v44  ;;  %4957 = vmatpush3.bf16.msra.mxu1 %v6225_v45  ;;  %v6568_v45 = vld [vmem:[%s7380_s5 + $0xa0] sm:$0xff]  }
 0x208   :  { %4938 = vmatprep.subr.bf16.mxu0 %v5618_v6  ;;  %4958 = vmatprep.subr.bf16.mxu1 %v5618_v6 }
 0x20b   :  { %4939 = vmatpush3.bf16.msra.mxu0 %v6234_v46  ;;  %4959 = vmatpush3.bf16.msra.mxu1 %v6239_v47  ;;  %v6573_v46 = vld [vmem:[%s7380_s5 + $0xe0] sm:$0xff]   ;;  %v6582_v47 = vld [vmem:[%s7380_s5 + $0x98] sm:$0xff]  }
 0x20c   :  { %4940 = vmatprep.subr.bf16.mxu0 %v5618_v6  ;;  %4960 = vmatprep.subr.bf16.mxu1 %v5618_v6 }
 0x20f   :  { %4941 = vmatpush3.bf16.msra.mxu0 %v6248_v48  ;;  %4961 = vmatpush3.bf16.msra.mxu1 %v6253_v49  ;;  %v6587_v48 = vld [vmem:[%s7380_s5 + $0xd8] sm:$0xff]   ;;  %v6596_v49 = vld [vmem:[%s7380_s5 + $0x90] sm:$0xff]  }
 0x210   :  { %4942 = vmatprep.subr.bf16.mxu0 %v5618_v6  ;;  %4962 = vmatprep.subr.bf16.mxu1 %v5618_v6 }
 0x213   :  { %4943 = vmatpush3.bf16.msra.mxu0 %v6262_v50  ;;  %4963 = vmatpush3.bf16.msra.mxu1 %v6267_v51  ;;  %v6601_v50 = vld [vmem:[%s7380_s5 + $0xd0] sm:$0xff]   ;;  %v6610_v51 = vld [vmem:[%s7380_s5 + $0x88] sm:$0xff]  }
 0x214   :  { %4944 = vmatprep.subr.bf16.mxu0 %v5618_v6  ;;  %4964 = vmatprep.subr.bf16.mxu1 %v5618_v6 }
 0x217   :  { %4945 = vmatpush3.bf16.msra.mxu0 %v6276_v52  ;;  %4965 = vmatpush3.bf16.msra.mxu1 %v6281_v53  ;;  %v6615_v52 = vld [vmem:[%s7380_s5 + $0xc8] sm:$0xff]   ;;  %v6624_v53 = vld [vmem:[%s7380_s5 + $0x80] sm:$0xff]  }
 0x218   :  { %4970 = vmatprep.subr.bf16.mxu0 %v5618_v6  ;;  %4990 = vmatprep.subr.bf16.mxu1 %v5618_v6 }
 0x21a   :  { %v6387_v2 = vpop.f32.mrf.mxu0  ;;  %v6389_v7 = vpop.f32.mrf.mxu1  ;;  %4947 = vmatmul.mubr.bf16.vlgmr.msra.gmra.mxu0 %v5881_v11  ;;  %4967 = vmatmul.mubr.bf16.vlgmr.msra.gmra.mxu1 %v5881_v11 }
 0x21b   :  { %4971 = vmatpush3.bf16.msra.mxu0 %v6378_v0  ;;  %4991 = vmatpush3.bf16.msra.mxu1 %v6383_v1 }
 0x21c   :  { %v4708_v10 = vpop.f32.mrf.mxu0  ;;  %v4728_v12 = vpop.f32.mrf.mxu1  ;;  %4972 = vmatprep.subr.bf16.mxu0 %v5618_v6  ;;  %4992 = vmatprep.subr.bf16.mxu1 %v5618_v6 }
 0x21d   :  { %4986 = vmatprep.mubr.msk.bf16.mxu0 %vm5619_vm0, %v5618_v6  ;;  %5006 = vmatprep.mubr.msk.bf16.mxu1 %vm5619_vm0, %v5618_v6 }
 0x21e   :  { %v6411_v13 = vpop.f32.mrf.mxu0  ;;  %v6413_v14 = vpop.f32.mrf.mxu1 }
 0x21f   :  { %v708_v15 = vpack.c.bf16 %v6411_v13, %v6387_v2  ;;  %v709_v16 = vpack.c.bf16 %v6413_v14, %v6389_v7  ;;  %4973 = vmatpush3.bf16.msra.mxu0 %v6398_v8  ;;  %4993 = vmatpush3.bf16.msra.mxu1 %v6403_v9 }
 0x220   :  { %v4709_v19 = vpop.f32.mrf.mxu0  ;;  %v4729_v20 = vpop.f32.mrf.mxu1  ;;  %4974 = vmatprep.subr.bf16.mxu0 %v5618_v6  ;;  %4994 = vmatprep.subr.bf16.mxu1 %v5618_v6 }
 0x223   :  { %4975 = vmatpush3.bf16.msra.mxu0 %v6424_v17  ;;  %4995 = vmatpush3.bf16.msra.mxu1 %v6429_v18 }
 0x224   :  { %4976 = vmatprep.subr.bf16.mxu0 %v5618_v6  ;;  %4996 = vmatprep.subr.bf16.mxu1 %v5618_v6 }
 0x227   :  { %4977 = vmatpush3.bf16.msra.mxu0 %v6438_v21  ;;  %4997 = vmatpush3.bf16.msra.mxu1 %v6443_v22 }
 0x228   :  { %4978 = vmatprep.subr.bf16.mxu0 %v5618_v6  ;;  %4998 = vmatprep.subr.bf16.mxu1 %v5618_v6 }
 0x22b   :  { %4979 = vmatpush3.bf16.msra.mxu0 %v6452_v37  ;;  %4999 = vmatpush3.bf16.msra.mxu1 %v6457_v4 }
 0x22c   :  { %4980 = vmatprep.subr.bf16.mxu0 %v5618_v6  ;;  %5000 = vmatprep.subr.bf16.mxu1 %v5618_v6 }
 0x22f   :  { %4981 = vmatpush3.bf16.msra.mxu0 %v6466_v5  ;;  %5001 = vmatpush3.bf16.msra.mxu1 %v6471_v23 }
 0x230   :  { %4982 = vmatprep.subr.bf16.mxu0 %v5618_v6  ;;  %5002 = vmatprep.subr.bf16.mxu1 %v5618_v6 }
 0x233   :  { %4983 = vmatpush3.bf16.msra.mxu0 %v6480_v24  ;;  %5003 = vmatpush3.bf16.msra.mxu1 %v6485_v25 }
 0x234   :  { %4984 = vmatprep.subr.bf16.mxu0 %v5618_v6  ;;  %5004 = vmatprep.subr.bf16.mxu1 %v5618_v6 }
 0x237   :  { %4985 = vmatpush3.bf16.msra.mxu0 %v6494_v26  ;;  %5005 = vmatpush3.bf16.msra.mxu1 %v6499_v27 }
 0x238   :  { %5010 = vmatprep.subr.bf16.mxu0 %v5618_v6  ;;  %5030 = vmatprep.subr.bf16.mxu1 %v5618_v6 }
 0x23a   :  { %v6517_v30 = vpop.f32.mrf.mxu0  ;;  %v6519_v31 = vpop.f32.mrf.mxu1  ;;  %4987 = vmatmul.mubr.bf16.vlgmr.msra.gmra.mxu0 %v5865_v3  ;;  %5007 = vmatmul.mubr.bf16.vlgmr.msra.gmra.mxu1 %v5865_v3 }
 0x23b   :  { %5011 = vmatpush3.bf16.msra.mxu0 %v6508_v28  ;;  %5031 = vmatpush3.bf16.msra.mxu1 %v6513_v29 }
 0x23c   :  { %v4748_v34 = vpop.f32.mrf.mxu0  ;;  %v4768_v35 = vpop.f32.mrf.mxu1  ;;  %5012 = vmatprep.subr.bf16.mxu0 %v5618_v6  ;;  %5032 = vmatprep.subr.bf16.mxu1 %v5618_v6 }
 0x23d   :  { %5026 = vmatprep.mubr.msk.bf16.mxu0 %vm5619_vm0, %v5618_v6  ;;  %5046 = vmatprep.mubr.msk.bf16.mxu1 %vm5619_vm0, %v5618_v6 }
 0x23e   :  { %v6541_v36 = vpop.f32.mrf.mxu0  ;;  %v6543_v38 = vpop.f32.mrf.mxu1 }
 0x23f   :  { %v710_v39 = vpack.c.bf16 %v6541_v36, %v6517_v30  ;;  %v711_v40 = vpack.c.bf16 %v6543_v38, %v6519_v31  ;;  %5013 = vmatpush3.bf16.msra.mxu0 %v6528_v32  ;;  %5033 = vmatpush3.bf16.msra.mxu1 %v6533_v33 }
 0x240   :  { %v4749_v43 = vpop.f32.mrf.mxu0  ;;  %v4769_v44 = vpop.f32.mrf.mxu1  ;;  %5014 = vmatprep.subr.bf16.mxu0 %v5618_v6  ;;  %5034 = vmatprep.subr.bf16.mxu1 %v5618_v6 }
 0x243   :  { %5015 = vmatpush3.bf16.msra.mxu0 %v6554_v41  ;;  %5035 = vmatpush3.bf16.msra.mxu1 %v6559_v42 }
 0x244   :  { %5016 = vmatprep.subr.bf16.mxu0 %v5618_v6  ;;  %5036 = vmatprep.subr.bf16.mxu1 %v5618_v6 }
 0x247   :  { %5017 = vmatpush3.bf16.msra.mxu0 %v6568_v45  ;;  %5037 = vmatpush3.bf16.msra.mxu1 %v6573_v46 }
 0x248   :  { %5018 = vmatprep.subr.bf16.mxu0 %v5618_v6  ;;  %5038 = vmatprep.subr.bf16.mxu1 %v5618_v6 }
 0x24b   :  { %5019 = vmatpush3.bf16.msra.mxu0 %v6582_v47  ;;  %5039 = vmatpush3.bf16.msra.mxu1 %v6587_v48 }
 0x24c   :  { %5020 = vmatprep.subr.bf16.mxu0 %v5618_v6  ;;  %5040 = vmatprep.subr.bf16.mxu1 %v5618_v6 }
 0x24f   :  { %5021 = vmatpush3.bf16.msra.mxu0 %v6596_v49  ;;  %5041 = vmatpush3.bf16.msra.mxu1 %v6601_v50 }
 0x250   :  { %5022 = vmatprep.subr.bf16.mxu0 %v5618_v6  ;;  %5042 = vmatprep.subr.bf16.mxu1 %v5618_v6 }
 0x253   :  { %5023 = vmatpush3.bf16.msra.mxu0 %v6610_v51  ;;  %5043 = vmatpush3.bf16.msra.mxu1 %v6615_v52 }
 0x254   :  { %5024 = vmatprep.subr.bf16.mxu0 %v5618_v6  ;;  %5044 = vmatprep.subr.bf16.mxu1 %v5618_v6 }
 0x257   :  { %5025 = vmatpush3.bf16.msra.mxu0 %v6624_v53  ;;  %5045 = vmatpush3.bf16.msra.mxu1 %v6629_v56 }
 0x258   :  { %5050 = vmatprep.subr.bf16.mxu0 %v5618_v6  ;;  %5070 = vmatprep.subr.bf16.mxu1 %v5618_v6 }
 0x25a   :  { %v6637_v57 = vpop.f32.mrf.mxu0  ;;  %v6639_v62 = vpop.f32.mrf.mxu1  ;;  %5027 = vmatmul.mubr.bf16.vlgmr.msra.gmra.mxu0 %v5865_v3  ;;  %5047 = vmatmul.mubr.bf16.vlgmr.msra.gmra.mxu1 %v5865_v3 }
 0x25b   :  { %5051 = vmatpush3.bf16.msra.mxu0 %v6378_v0  ;;  %5071 = vmatpush3.bf16.msra.mxu1 %v6383_v1 }
 0x25c   :  { %v4788_v63 = vpop.f32.mrf.mxu0  ;;  %v4808_v10 = vpop.f32.mrf.mxu1  ;;  %5052 = vmatprep.subr.bf16.mxu0 %v5618_v6  ;;  %5072 = vmatprep.subr.bf16.mxu1 %v5618_v6 }
 0x25d   :  { %5066 = vmatprep.mubr.msk.bf16.mxu0 %vm5619_vm0, %v5618_v6  ;;  %5086 = vmatprep.mubr.msk.bf16.mxu1 %vm5619_vm0, %v5618_v6 }
 0x25e   :  { %v6651_v12 = vpop.f32.mrf.mxu0  ;;  %v6653_v19 = vpop.f32.mrf.mxu1 }
 0x25f   :  { %v712_v3 = vpack.c.bf16 %v6651_v12, %v6637_v57  ;;  %v713_v0 = vpack.c.bf16 %v6653_v19, %v6639_v62  ;;  %5053 = vmatpush3.bf16.msra.mxu0 %v6398_v8  ;;  %5073 = vmatpush3.bf16.msra.mxu1 %v6403_v9 }
 0x260   :  { %v4789_v1 = vpop.f32.mrf.mxu0  ;;  %v4809_v20 = vpop.f32.mrf.mxu1  ;;  %5054 = vmatprep.subr.bf16.mxu0 %v5618_v6  ;;  %5074 = vmatprep.subr.bf16.mxu1 %v5618_v6 }
 0x263   :  { %5055 = vmatpush3.bf16.msra.mxu0 %v6424_v17  ;;  %5075 = vmatpush3.bf16.msra.mxu1 %v6429_v18 }
 0x264   :  { %5056 = vmatprep.subr.bf16.mxu0 %v5618_v6  ;;  %5076 = vmatprep.subr.bf16.mxu1 %v5618_v6 }
 0x267   :  { %5057 = vmatpush3.bf16.msra.mxu0 %v6438_v21  ;;  %5077 = vmatpush3.bf16.msra.mxu1 %v6443_v22 }
 0x268   :  { %5058 = vmatprep.subr.bf16.mxu0 %v5618_v6  ;;  %5078 = vmatprep.subr.bf16.mxu1 %v5618_v6 }
 0x26b   :  { %5059 = vmatpush3.bf16.msra.mxu0 %v6452_v37  ;;  %5079 = vmatpush3.bf16.msra.mxu1 %v6457_v4 }
 0x26c   :  { %5060 = vmatprep.subr.bf16.mxu0 %v5618_v6  ;;  %5080 = vmatprep.subr.bf16.mxu1 %v5618_v6 }
 0x26f   :  { %5061 = vmatpush3.bf16.msra.mxu0 %v6466_v5  ;;  %5081 = vmatpush3.bf16.msra.mxu1 %v6471_v23 }
 0x270   :  { %5062 = vmatprep.subr.bf16.mxu0 %v5618_v6  ;;  %5082 = vmatprep.subr.bf16.mxu1 %v5618_v6 }
 0x273   :  { %5063 = vmatpush3.bf16.msra.mxu0 %v6480_v24  ;;  %5083 = vmatpush3.bf16.msra.mxu1 %v6485_v25 }
 0x274   :  { %5064 = vmatprep.subr.bf16.mxu0 %v5618_v6  ;;  %5084 = vmatprep.subr.bf16.mxu1 %v5618_v6 }
 0x277   :  { %5065 = vmatpush3.bf16.msra.mxu0 %v6494_v26  ;;  %5085 = vmatpush3.bf16.msra.mxu1 %v6499_v27 }
 0x278   :  { %5090 = vmatprep.subr.bf16.mxu0 %v5618_v6  ;;  %5110 = vmatprep.subr.bf16.mxu1 %v5618_v6 }
 0x27a   :  { %v860_v8 = vpop.f32.mrf.mxu0  ;;  %v949_v9 = vpop.f32.mrf.mxu1  ;;  %5067 = vmatmul.mubr.bf16.vlgmr.msra.gmra.mxu0 %v5881_v11  ;;  %5087 = vmatmul.mubr.bf16.vlgmr.msra.gmra.mxu1 %v5881_v11 }
 0x27b   :  { %5091 = vmatpush3.bf16.msra.mxu0 %v6508_v28  ;;  %5111 = vmatpush3.bf16.msra.mxu1 %v6513_v29 }
 0x27c   :  { %v4828_v17 = vpop.f32.mrf.mxu0  ;;  %v4848_v18 = vpop.f32.mrf.mxu1  ;;  %5092 = vmatprep.subr.bf16.mxu0 %v5618_v6  ;;  %5112 = vmatprep.subr.bf16.mxu1 %v5618_v6 }
 0x27d   :  { %5106 = vmatprep.mubr.msk.bf16.mxu0 %vm5619_vm0, %v5618_v6  ;;  %5126 = vmatprep.mubr.msk.bf16.mxu1 %vm5619_vm0, %v5618_v6 }
 0x27e   :  { %v863_v21 = vpop.f32.mrf.mxu0  ;;  %v952_v22 = vpop.f32.mrf.mxu1 }
 0x27f   :  { %5093 = vmatpush3.bf16.msra.mxu0 %v6528_v32  ;;  %5113 = vmatpush3.bf16.msra.mxu1 %v6533_v33  ;;  %v1298_v5 = vpack.c.bf16 %v863_v21, %v860_v8  ;;  %v1299_v23 = vpack.c.bf16 %v952_v22, %v949_v9 }
 0x280   :  { %v4829_v37 = vpop.f32.mrf.mxu0  ;;  %v4849_v4 = vpop.f32.mrf.mxu1  ;;  %5094 = vmatprep.subr.bf16.mxu0 %v5618_v6  ;;  %5114 = vmatprep.subr.bf16.mxu1 %v5618_v6 }
 0x281   :  { %v1903_v24 = vsel %vm1898_vm1, %v1298_v5, 0  ;;  %v1950_v25 = vsel %vm1898_vm1, %v1299_v23, 0 }
 0x283   :  { %5095 = vmatpush3.bf16.msra.mxu0 %v6554_v41  ;;  %5115 = vmatpush3.bf16.msra.mxu1 %v6559_v42 }
 0x284   :  { %5096 = vmatprep.subr.bf16.mxu0 %v5618_v6  ;;  %5116 = vmatprep.subr.bf16.mxu1 %v5618_v6 }
 0x287   :  { %5097 = vmatpush3.bf16.msra.mxu0 %v6568_v45  ;;  %5117 = vmatpush3.bf16.msra.mxu1 %v6573_v46 }
 0x288   :  { %5098 = vmatprep.subr.bf16.mxu0 %v5618_v6  ;;  %5118 = vmatprep.subr.bf16.mxu1 %v5618_v6 }
 0x28b   :  { %5099 = vmatpush3.bf16.msra.mxu0 %v6582_v47  ;;  %5119 = vmatpush3.bf16.msra.mxu1 %v6587_v48 }
 0x28c   :  { %5100 = vmatprep.subr.bf16.mxu0 %v5618_v6  ;;  %5120 = vmatprep.subr.bf16.mxu1 %v5618_v6 }
 0x28f   :  { %5101 = vmatpush3.bf16.msra.mxu0 %v6596_v49  ;;  %5121 = vmatpush3.bf16.msra.mxu1 %v6601_v50 }
 0x290   :  { %5102 = vmatprep.subr.bf16.mxu0 %v5618_v6  ;;  %5122 = vmatprep.subr.bf16.mxu1 %v5618_v6 }
 0x293   :  { %5103 = vmatpush3.bf16.msra.mxu0 %v6610_v51  ;;  %5123 = vmatpush3.bf16.msra.mxu1 %v6615_v52 }
 0x294   :  { %5104 = vmatprep.subr.bf16.mxu0 %v5618_v6  ;;  %5124 = vmatprep.subr.bf16.mxu1 %v5618_v6 }
 0x297   :  { %5105 = vmatpush3.bf16.msra.mxu0 %v6624_v53  ;;  %5125 = vmatpush3.bf16.msra.mxu1 %v6629_v56 }
 0x298   :  { %5130 = vmatprep.subr.bf16.mxu0 %v5618_v6  ;;  %5136 = vmatprep.subr.bf16.mxu1 %v5618_v6 }
 0x29a   :  { %v1038_v26 = vpop.f32.mrf.mxu0  ;;  %v1127_v27 = vpop.f32.mrf.mxu1  ;;  %5107 = vmatmul.mubr.bf16.vlgmr.msra.gmra.mxu0 %v5881_v11  ;;  %5127 = vmatmul.mubr.bf16.vlgmr.msra.gmra.mxu1 %v5881_v11 }
 0x29b   :  { %5131 = vmatpush3.bf16.xpose.msra.mxu0 %v1903_v24  ;;  %5137 = vmatpush3.bf16.xpose.msra.mxu1 %v1950_v25 }
 0x29c   :  { %v4868_v28 = vpop.f32.mrf.mxu0  ;;  %v4888_v29 = vpop.f32.mrf.mxu1  ;;  %5132 = vmatprep.mubr.msk.bf16.mxu0 %vm5619_vm0, %v5618_v6  ;;  %5138 = vmatprep.mubr.msk.bf16.mxu1 %vm5619_vm0, %v5618_v6 }
 0x29d   :  { %5142 = vmatprep.subr.bf16.mxu0 %v5618_v6  ;;  %5148 = vmatprep.subr.bf16.mxu1 %v5618_v6 }
 0x29e   :  { %v1041_v32 = vpop.f32.mrf.mxu0  ;;  %v1130_v33 = vpop.f32.mrf.mxu1 }
 0x29f   :  { %v1300_v34 = vpack.c.bf16 %v1041_v32, %v1038_v26  ;;  %v1301_v35 = vpack.c.bf16 %v1130_v33, %v1127_v27 }
 0x2a0   :  { %v4869_v41 = vpop.f32.mrf.mxu0  ;;  %v4889_v11 = vpop.f32.mrf.mxu1 }
 0x2a1   :  { %v1997_v42 = vsel %vm1898_vm1, %v1300_v34, 0  ;;  %v2044_v43 = vsel %vm1898_vm1, %v1301_v35, 0 }
 0x2a2   :  { %5133 = vmatmul.mubr.msk.bf16.vlgmr.msra.gmra.mxu0 %vm1898_vm1, %v706_v60  ;;  %5139 = vmatmul.mubr.msk.bf16.vlgmr.msra.gmra.mxu1 %vm1898_vm1, %v707_v61 }
 0x2a3   :  { %5143 = vmatpush3.bf16.xpose.msra.mxu0 %v1997_v42  ;;  %5149 = vmatpush3.bf16.xpose.msra.mxu1 %v2044_v43 }
 0x2a4   :  { %5144 = vmatprep.mubr.msk.bf16.mxu0 %vm5619_vm0, %v5618_v6  ;;  %5150 = vmatprep.mubr.msk.bf16.mxu1 %vm5619_vm0, %v5618_v6 }
 0x2a5   :  { %5154 = vmatprep.subr.bf16.mxu0 %v5618_v6  ;;  %5160 = vmatprep.subr.bf16.mxu1 %v5618_v6 }
 0x2aa   :  { %5145 = vmatmul.mubr.msk.bf16.vlgmr.msra.gmra.mxu0 %vm1898_vm1, %v708_v15  ;;  %5151 = vmatmul.mubr.msk.bf16.vlgmr.msra.gmra.mxu1 %vm1898_vm1, %v709_v16 }
 0x2ab   :  { %5156 = vmatprep.mubr.msk.bf16.mxu0 %vm5619_vm0, %v5618_v6  ;;  %5162 = vmatprep.mubr.msk.bf16.mxu1 %vm5619_vm0, %v5618_v6 }
 0x2ba   :  { %v1168_v54 = vpop.f32.mrf.mxu0  ;;  %v1209_v55 = vpop.f32.mrf.mxu1 }
 0x2bc   :  { %v4908_v58 = vpop.f32.mrf.mxu0  ;;  %v4928_v59 = vpop.f32.mrf.mxu1 }
 0x2be   :  { %v1171_v60 = vpop.f32.mrf.mxu0  ;;  %v1212_v61 = vpop.f32.mrf.mxu1 }
 0x2bf   :  { %v1302_v2 = vpack.c.bf16 %v1171_v60, %v1168_v54  ;;  %v1303_v13 = vpack.c.bf16 %v1212_v61, %v1209_v55 }
 0x2c0   :  { %v4909_v15 = vpop.f32.mrf.mxu0  ;;  %v4929_v44 = vpop.f32.mrf.mxu1 }
 0x2c1   :  { %v2091_v7 = vsel %vm1898_vm1, %v1302_v2, 0  ;;  %v2138_v14 = vsel %vm1898_vm1, %v1303_v13, 0 }
 0x2c2   :  { %5155 = vmatpush3.bf16.xpose.msra.mxu0 %v2091_v7  ;;  %5161 = vmatpush3.bf16.xpose.msra.mxu1 %v2138_v14 }
 0x2c3   :  { %5166 = vmatprep.subr.bf16.mxu0 %v5618_v6  ;;  %5172 = vmatprep.subr.bf16.mxu1 %v5618_v6 }
 0x2c9   :  { %5157 = vmatmul.mubr.msk.bf16.vlgmr.msra.gmra.mxu0 %vm1898_vm1, %v710_v39  ;;  %5163 = vmatmul.mubr.msk.bf16.vlgmr.msra.gmra.mxu1 %vm1898_vm1, %v711_v40 }
 0x2ca   :  { %5168 = vmatprep.mubr.msk.bf16.mxu0 %vm5619_vm0, %v5618_v6  ;;  %5174 = vmatprep.mubr.msk.bf16.mxu1 %vm5619_vm0, %v5618_v6 }
 0x2da   :  { %v1250_v16 = vpop.f32.mrf.mxu0  ;;  %v1291_v45 = vpop.f32.mrf.mxu1 }
 0x2dc   :  { %v4948_v46 = vpop.f32.mrf.mxu0  ;;  %v4968_v47 = vpop.f32.mrf.mxu1 }
 0x2de   :  { %v1253_v48 = vpop.f32.mrf.mxu0  ;;  %v1294_v49 = vpop.f32.mrf.mxu1 }
 0x2df   :  { %v1304_v30 = vpack.c.bf16 %v1253_v48, %v1250_v16  ;;  %v1305_v36 = vpack.c.bf16 %v1294_v49, %v1291_v45 }
 0x2e0   :  { %v4949_v39 = vpop.f32.mrf.mxu0  ;;  %v4969_v50 = vpop.f32.mrf.mxu1 }
 0x2e1   :  { %v2185_v31 = vsel %vm1898_vm1, %v1304_v30, 0  ;;  %v2232_v38 = vsel %vm1898_vm1, %v1305_v36, 0 }
 0x2e2   :  { %5167 = vmatpush3.bf16.xpose.msra.mxu0 %v2185_v31  ;;  %5173 = vmatpush3.bf16.xpose.msra.mxu1 %v2232_v38 }
 0x2e3   :  { %5178 = vmatprep.subr.bf16.mxu0 %v5618_v6  ;;  %5184 = vmatprep.subr.bf16.mxu1 %v5618_v6 }
 0x2e9   :  { %5169 = vmatmul.mubr.msk.bf16.vlgmr.msra.gmra.mxu0 %vm1898_vm1, %v712_v3  ;;  %5175 = vmatmul.mubr.msk.bf16.vlgmr.msra.gmra.mxu1 %vm1898_vm1, %v713_v0 }
 0x2ea   :  { %5180 = vmatprep.mubr.msk.bf16.mxu0 %vm5619_vm0, %v5618_v6  ;;  %5186 = vmatprep.mubr.msk.bf16.mxu1 %vm5619_vm0, %v5618_v6 }
 0x2fa   :  { %v1452_v40 = vpop.f32.mrf.mxu0  ;;  %v1541_v51 = vpop.f32.mrf.mxu1 }
 0x2fc   :  { %v4988_v52 = vpop.f32.mrf.mxu0  ;;  %v5008_v53 = vpop.f32.mrf.mxu1 }
 0x2fe   :  { %v1455_v56 = vpop.f32.mrf.mxu0  ;;  %v1544_v63 = vpop.f32.mrf.mxu1 }
 0x2ff   :  { %v1890_v57 = vpack.c.bf16 %v1455_v56, %v1452_v40  ;;  %v1891_v10 = vpack.c.bf16 %v1544_v63, %v1541_v51 }
 0x300   :  { %v4989_v12 = vpop.f32.mrf.mxu0  ;;  %v5009_v3 = vpop.f32.mrf.mxu1 }
 0x301   :  { %5179 = vmatpush3.bf16.msra.mxu0 %v1890_v57  ;;  %5185 = vmatpush3.bf16.msra.mxu1 %v1891_v10 }
 0x302   :  { %5190 = vmatprep.subr.bf16.mxu0 %v5618_v6  ;;  %5196 = vmatprep.subr.bf16.mxu1 %v5618_v6 }
 0x31a   :  { %v6797_v62 = vpop.f32.mrf.mxu0  ;;  %v6799_v19 = vpop.f32.mrf.mxu1 }
 0x31c   :  { %v5028_v0 = vpop.f32.mrf.mxu0  ;;  %v5048_v1 = vpop.f32.mrf.mxu1 }
 0x31e   :  { %v6801_v20 = vpop.f32.mrf.mxu0  ;;  %v6803_v8 = vpop.f32.mrf.mxu1 }
 0x31f   :  { %v1892_v9 = vpack.c.bf16 %v6801_v20, %v6797_v62  ;;  %v1893_v17 = vpack.c.bf16 %v6803_v8, %v6799_v19 }
 0x320   :  { %v5029_v18 = vpop.f32.mrf.mxu0  ;;  %v5049_v21 = vpop.f32.mrf.mxu1 }
 0x33a   :  { %v6809_v22 = vpop.f32.mrf.mxu0  ;;  %v6811_v37 = vpop.f32.mrf.mxu1 }
 0x33c   :  { %v5068_v4 = vpop.f32.mrf.mxu0  ;;  %v5088_v5 = vpop.f32.mrf.mxu1 }
 0x33e   :  { %v6813_v23 = vpop.f32.mrf.mxu0  ;;  %v6815_v24 = vpop.f32.mrf.mxu1 }
 0x33f   :  { %v1894_v25 = vpack.c.bf16 %v6813_v23, %v6809_v22  ;;  %v1895_v26 = vpack.c.bf16 %v6815_v24, %v6811_v37 }
 0x340   :  { %v5069_v27 = vpop.f32.mrf.mxu0  ;;  %v5089_v28 = vpop.f32.mrf.mxu1 }
 0x35a   :  { %v6821_v29 = vpop.f32.mrf.mxu0  ;;  %v6823_v32 = vpop.f32.mrf.mxu1 }
 0x35c   :  { %v5108_v33 = vpop.f32.mrf.mxu0  ;;  %v5128_v34 = vpop.f32.mrf.mxu1 }
 0x35e   :  { %v6825_v35 = vpop.f32.mrf.mxu0  ;;  %v6827_v41 = vpop.f32.mrf.mxu1 }
 0x35f   :  { %v1896_v11 = vpack.c.bf16 %v6825_v35, %v6821_v29  ;;  %v1897_v42 = vpack.c.bf16 %v6827_v41, %v6823_v32 }
 0x360   :  { %v5109_v43 = vpop.f32.mrf.mxu0  ;;  %v5129_v54 = vpop.f32.mrf.mxu1 }
 0x362   :  { %v6833_v55 = vpop.f32.mrf.mxu0  ;;  %v6835_v58 = vpop.f32.mrf.mxu1 }
 0x363   :  { %v2276_v59 = vsel %vm2275_vm2, %v6833_v55, -inf  ;;  %v2282_v15 = vsel %vm2275_vm2, %v6835_v58, -inf }
 0x364   :  { %v5140_v60 = vpop.f32.mrf.mxu1  ;;  %2277 = vmax.xlane.f32.xlu0 %v2276_v59  ;;  %v5134_v61 = vpop.f32.mrf.mxu0 }
 0x366   :  { %v6839_v2 = vpop.f32.mrf.mxu0  ;;  %v6841_v13 = vpop.f32.mrf.mxu1 }
 0x367   :  { %v2279_v44 = vsel %vm2275_vm2, %v6839_v2, -inf  ;;  %v2285_v46 = vsel %vm2275_vm2, %v6841_v13, -inf }
 0x368   :  { %v5141_v7 = vpop.f32.mrf.mxu1  ;;  %2283 = vmax.xlane.f32.xlu0 %v2282_v15  ;;  %2280 = vmax.xlane.f32.xlu1 %v2279_v44  ;;  %v5135_v14 = vpop.f32.mrf.mxu0 }
 0x36a   :  { %v6847_v16 = vpop.f32.mrf.mxu0  ;;  %v6849_v45 = vpop.f32.mrf.mxu1 }
 0x36b   :  { %v2288_v47 = vsel %vm2275_vm2, %v6847_v16, -inf  ;;  %v2294_v39 = vsel %vm2275_vm2, %v6849_v45, -inf }
 0x36c   :  { %v5152_v48 = vpop.f32.mrf.mxu1  ;;  %2286 = vmax.xlane.f32.xlu1 %v2285_v46  ;;  %2289 = vmax.xlane.f32.xlu0 %v2288_v47  ;;  %v5146_v49 = vpop.f32.mrf.mxu0 }
 0x36e   :  { %v6855_v30 = vpop.f32.mrf.mxu0  ;;  %v6857_v36 = vpop.f32.mrf.mxu1 }
 0x36f   :  { %v2291_v50 = vsel %vm2275_vm2, %v6855_v30, -inf  ;;  %v2297_v40 = vsel %vm2275_vm2, %v6857_v36, -inf }
 0x370   :  { %v5153_v31 = vpop.f32.mrf.mxu1  ;;  %2295 = vmax.xlane.f32.xlu0 %v2294_v39  ;;  %2292 = vmax.xlane.f32.xlu1 %v2291_v50  ;;  %v5147_v38 = vpop.f32.mrf.mxu0 }
 0x374   :  { %2298 = vmax.xlane.f32.xlu1 %v2297_v40 }
 0x389   :  { %v6865_v51 = vpop.f32.mrf.mxu0  ;;  %v6867_v52 = vpop.f32.mrf.mxu1 }
 0x38a   :  { %v2300_v53 = vsel %vm2275_vm2, %v6865_v51, -inf  ;;  %v2306_v12 = vsel %vm2275_vm2, %v6867_v52, -inf }
 0x38b   :  { %v5164_v56 = vpop.f32.mrf.mxu1  ;;  %2301 = vmax.xlane.f32.xlu0 %v2300_v53  ;;  %v5158_v63 = vpop.f32.mrf.mxu0 }
 0x38d   :  { %v6871_v57 = vpop.f32.mrf.mxu0  ;;  %v6873_v10 = vpop.f32.mrf.mxu1 }
 0x38e   :  { %v2303_v3 = vsel %vm2275_vm2, %v6871_v57, -inf  ;;  %v2309_v18 = vsel %vm2275_vm2, %v6873_v10, -inf }
 0x38f   :  { %v5165_v0 = vpop.f32.mrf.mxu1  ;;  %2307 = vmax.xlane.f32.xlu0 %v2306_v12  ;;  %2304 = vmax.xlane.f32.xlu1 %v2303_v3  ;;  %v5159_v1 = vpop.f32.mrf.mxu0 }
 0x393   :  { %2310 = vmax.xlane.f32.xlu1 %v2309_v18 }
 0x3a9   :  { %v6881_v21 = vpop.f32.mrf.mxu0  ;;  %v6883_v4 = vpop.f32.mrf.mxu1 }
 0x3aa   :  { %v2312_v5 = vsel %vm2275_vm2, %v6881_v21, -inf  ;;  %v2318_v43 = vsel %vm2275_vm2, %v6883_v4, -inf }
 0x3ab   :  { %v5176_v27 = vpop.f32.mrf.mxu1  ;;  %2313 = vmax.xlane.f32.xlu0 %v2312_v5  ;;  %v5170_v28 = vpop.f32.mrf.mxu0 }
 0x3ad   :  { %v6887_v33 = vpop.f32.mrf.mxu0  ;;  %v6889_v34 = vpop.f32.mrf.mxu1 }
 0x3ae   :  { %v2315_v54 = vsel %vm2275_vm2, %v6887_v33, -inf  ;;  %v2321_v61 = vsel %vm2275_vm2, %v6889_v34, -inf }
 0x3af   :  { %v5177_v59 = vpop.f32.mrf.mxu1  ;;  %2319 = vmax.xlane.f32.xlu0 %v2318_v43  ;;  %2316 = vmax.xlane.f32.xlu1 %v2315_v54  ;;  %v5171_v60 = vpop.f32.mrf.mxu0 }
 0x3b3   :  { %2322 = vmax.xlane.f32.xlu1 %v2321_v61 }
 0x3ed   :  { %v2278_v15 = vpop.xlane.xlu0 %2277 }
 0x3ee   :  { %v2324_v44 = vsub.f32 %v6833_v55, %v2278_v15 }
 0x3f0   :  { %v2340_v7 = vmul.f32 1.442695, %v2324_v44 }
 0x3f1   :  { %v2284_v14 = vpop.xlane.xlu0 %2283  ;;  %v2281_v46 = vpop.xlane.xlu1 %2280 }
 0x3f2   :  { %5488 = vpow2.f32 %v2340_v7  ;;  %v2326_v47 = vsub.f32 %v6835_v58, %v2284_v14  ;;  %v2325_v48 = vsub.f32 %v6839_v2, %v2281_v46 }
 0x3f4   :  { %v2344_v49 = vmul.f32 1.442695, %v2326_v47  ;;  %v2342_v39 = vmul.f32 1.442695, %v2325_v48 }
 0x3f5   :  { %v2287_v50 = vpop.xlane.xlu1 %2286  ;;  %v2290_v31 = vpop.xlane.xlu0 %2289 }
 0x3f6   :  { %5490 = vpow2.f32 %v2344_v49  ;;  %v2327_v38 = vsub.f32 %v6841_v13, %v2287_v50  ;;  %v2328_v40 = vsub.f32 %v6847_v16, %v2290_v31 }
 0x3f7   :  { %5492 = vpow2.f32 %v2342_v39 }
 0x3f8   :  { %v2346_v53 = vmul.f32 1.442695, %v2327_v38  ;;  %v2348_v55 = vmul.f32 1.442695, %v2328_v40 }
 0x3f9   :  { %v2296_v56 = vpop.xlane.xlu0 %2295  ;;  %v2293_v63 = vpop.xlane.xlu1 %2292 }
 0x3fa   :  { %5494 = vpow2.f32 %v2346_v53  ;;  %v2330_v12 = vsub.f32 %v6849_v45, %v2296_v56  ;;  %v2329_v58 = vsub.f32 %v6855_v30, %v2293_v63 }
 0x3fb   :  { %5496 = vpow2.f32 %v2348_v55 }
 0x3fc   :  { %v2352_v2 = vmul.f32 1.442695, %v2330_v12  ;;  %v2350_v3 = vmul.f32 1.442695, %v2329_v58 }
 0x3fd   :  { %v2299_v0 = vpop.xlane.xlu1 %2298 }
 0x3fe   :  { %5498 = vpow2.f32 %v2352_v2  ;;  %v2331_v1 = vsub.f32 %v6857_v36, %v2299_v0 }
 0x3ff   :  { %v6905_v13 = vpop.eup %5488  ;;  %5500 = vpow2.f32 %v2350_v3 }
 0x400   :  { %v2354_v16 = vmul.f32 1.442695, %v2331_v1  ;;  %v2372_v18 = vsel %vm2275_vm2, %v6905_v13, 0.0 }
 0x401   :  { %2373 = vadd.xlane.f32.xlu0 %v2372_v18 }
 0x402   :  { %5502 = vpow2.f32 %v2354_v16 }
 0x403   :  { %v6909_v5 = vpop.eup %5490 }
 0x404   :  { %v6911_v45 = vpop.eup %5492  ;;  %v2378_v30 = vsel %vm2275_vm2, %v6909_v5, 0.0 }
 0x405   :  { %2379 = vadd.xlane.f32.xlu0 %v2378_v30  ;;  %v2375_v36 = vsel %vm2275_vm2, %v6911_v45, 0.0 }
 0x406   :  { %2376 = vadd.xlane.f32.xlu1 %v2375_v36 }
 0x407   :  { %v6917_v27 = vpop.eup %5494 }
 0x408   :  { %v6919_v28 = vpop.eup %5496  ;;  %v2381_v43 = vsel %vm2275_vm2, %v6917_v27, 0.0 }
 0x409   :  { %v2384_v54 = vsel %vm2275_vm2, %v6919_v28, 0.0 }
 0x40a   :  { %2385 = vadd.xlane.f32.xlu0 %v2384_v54  ;;  %2382 = vadd.xlane.f32.xlu1 %v2381_v43 }
 0x40b   :  { %v6925_v59 = vpop.eup %5498 }
 0x40c   :  { %v6927_v60 = vpop.eup %5500  ;;  %v2390_v61 = vsel %vm2275_vm2, %v6925_v59, 0.0 }
 0x40d   :  { %v2387_v15 = vsel %vm2275_vm2, %v6927_v60, 0.0 }
 0x40e   :  { %2391 = vadd.xlane.f32.xlu0 %v2390_v61  ;;  %2388 = vadd.xlane.f32.xlu1 %v2387_v15 }
 0x40f   :  { %v6933_v44 = vpop.eup %5502 }
 0x410   :  { %v2393_v7 = vsel %vm2275_vm2, %v6933_v44, 0.0 }
 0x412   :  { %2394 = vadd.xlane.f32.xlu1 %v2393_v7 }
 0x414   :  { %v2302_v14 = vpop.xlane.xlu0 %2301 }
 0x415   :  { %v2332_v46 = vsub.f32 %v6865_v51, %v2302_v14 }
 0x417   :  { %v2356_v47 = vmul.f32 1.442695, %v2332_v46 }
 0x418   :  { %v2308_v48 = vpop.xlane.xlu0 %2307  ;;  %v2305_v49 = vpop.xlane.xlu1 %2304 }
 0x419   :  { %5504 = vpow2.f32 %v2356_v47  ;;  %v2334_v39 = vsub.f32 %v6867_v52, %v2308_v48  ;;  %v2333_v50 = vsub.f32 %v6871_v57, %v2305_v49 }
 0x41b   :  { %v2360_v31 = vmul.f32 1.442695, %v2334_v39  ;;  %v2358_v38 = vmul.f32 1.442695, %v2333_v50 }
 0x41c   :  { %v2311_v40 = vpop.xlane.xlu1 %2310 }
 0x41d   :  { %5506 = vpow2.f32 %v2360_v31  ;;  %v2335_v53 = vsub.f32 %v6873_v10, %v2311_v40 }
 0x41e   :  { %5508 = vpow2.f32 %v2358_v38 }
 0x41f   :  { %v2362_v55 = vmul.f32 1.442695, %v2335_v53 }
 0x421   :  { %5510 = vpow2.f32 %v2362_v55 }
 0x426   :  { %v6941_v56 = vpop.eup %5504 }
 0x427   :  { %v2396_v51 = vsel %vm2275_vm2, %v6941_v56, 0.0 }
 0x428   :  { %2397 = vadd.xlane.f32.xlu0 %v2396_v51 }
 0x42a   :  { %v6945_v63 = vpop.eup %5506 }
 0x42b   :  { %v6947_v52 = vpop.eup %5508  ;;  %v2402_v57 = vsel %vm2275_vm2, %v6945_v63, 0.0 }
 0x42c   :  { %2403 = vadd.xlane.f32.xlu0 %v2402_v57  ;;  %v2399_v10 = vsel %vm2275_vm2, %v6947_v52, 0.0 }
 0x42d   :  { %2400 = vadd.xlane.f32.xlu1 %v2399_v10 }
 0x42e   :  { %v6953_v12 = vpop.eup %5510 }
 0x42f   :  { %v2405_v58 = vsel %vm2275_vm2, %v6953_v12, 0.0 }
 0x431   :  { %2406 = vadd.xlane.f32.xlu1 %v2405_v58 }
 0x434   :  { %v2314_v2 = vpop.xlane.xlu0 %2313 }
 0x435   :  { %v2336_v3 = vsub.f32 %v6881_v21, %v2314_v2 }
 0x437   :  { %v2364_v0 = vmul.f32 1.442695, %v2336_v3 }
 0x438   :  { %v2320_v1 = vpop.xlane.xlu0 %2319  ;;  %v2317_v16 = vpop.xlane.xlu1 %2316 }
 0x439   :  { %5512 = vpow2.f32 %v2364_v0  ;;  %v2338_v18 = vsub.f32 %v6883_v4, %v2320_v1  ;;  %v2337_v30 = vsub.f32 %v6887_v33, %v2317_v16 }
 0x43b   :  { %v2368_v36 = vmul.f32 1.442695, %v2338_v18  ;;  %v2366_v43 = vmul.f32 1.442695, %v2337_v30 }
 0x43c   :  { %v2323_v54 = vpop.xlane.xlu1 %2322 }
 0x43d   :  { %5514 = vpow2.f32 %v2368_v36  ;;  %v2339_v61 = vsub.f32 %v6889_v34, %v2323_v54 }
 0x43e   :  { %5516 = vpow2.f32 %v2366_v43 }
 0x43f   :  { %v2370_v15 = vmul.f32 1.442695, %v2339_v61 }
 0x441   :  { %5518 = vpow2.f32 %v2370_v15 }
 0x446   :  { %v6961_v7 = vpop.eup %5512 }
 0x447   :  { %v2408_v21 = vsel %vm2275_vm2, %v6961_v7, 0.0 }
 0x448   :  { %2409 = vadd.xlane.f32.xlu0 %v2408_v21 }
 0x44a   :  { %v6965_v14 = vpop.eup %5514 }
 0x44b   :  { %v6967_v4 = vpop.eup %5516  ;;  %v2414_v33 = vsel %vm2275_vm2, %v6965_v14, 0.0 }
 0x44c   :  { %2415 = vadd.xlane.f32.xlu0 %v2414_v33  ;;  %v2411_v34 = vsel %vm2275_vm2, %v6967_v4, 0.0 }
 0x44d   :  { %2412 = vadd.xlane.f32.xlu1 %v2411_v34 }
 0x44e   :  { %v6973_v46 = vpop.eup %5518 }
 0x44f   :  { %v2417_v47 = vsel %vm2275_vm2, %v6973_v46, 0.0 }
 0x451   :  { %2418 = vadd.xlane.f32.xlu1 %v2417_v47 }
 0x48a   :  { %v2374_v48 = vpop.xlane.xlu0 %2373 }
 0x48b   :  { %5520 = vrcp.f32 %v2374_v48  ;;  %v5396_v48 = vld [vmem:[%s7381_s6 + $0x28] sm:$0xff]  }
 0x48e   :  { %v2380_v49 = vpop.xlane.xlu0 %2379 }
 0x48f   :  { %v2377_v39 = vpop.xlane.xlu1 %2376 }
 0x490   :  { %5522 = vrcp.f32 %v2377_v39 }
 0x491   :  { %5524 = vrcp.f32 %v2380_v49 }
 0x493   :  { %v2386_v50 = vpop.xlane.xlu0 %2385  ;;  %v2383_v31 = vpop.xlane.xlu1 %2382 }
 0x494   :  { %5526 = vrcp.f32 %v2383_v31 }
 0x495   :  { %5528 = vrcp.f32 %v2386_v50 }
 0x497   :  { %v2392_v38 = vpop.xlane.xlu0 %2391  ;;  %v2389_v40 = vpop.xlane.xlu1 %2388 }
 0x498   :  { %5530 = vrcp.f32 %v2389_v40  ;;  %v5521_v53 = vpop.eup %5520 }
 0x499   :  { %5532 = vrcp.f32 %v2392_v38  ;;  %v2436_v57 = vmul.f32 %v5521_v53, %v6905_v13  ;;  %v5397_v38 = vld [vmem:[%s7381_s6 + $0x20] sm:$0xff]  }
 0x49b   :  { %v2395_v55 = vpop.xlane.xlu1 %2394 }
 0x49c   :  { %5534 = vrcp.f32 %v2395_v55  ;;  %v5398_v55 = vld [vmem:[%s7381_s6 + $0x38] sm:$0xff]  }
 0x49d   :  { %v5523_v51 = vpop.eup %5522 }
 0x49e   :  { %v2437_v10 = vmul.f32 %v5523_v51, %v6911_v45  ;;  %v5525_v58 = vpop.eup %5524 }
 0x49f   :  { %v2438_v0 = vmul.f32 %v5525_v58, %v6909_v5 }
 0x4a0   :  { %v2452_v2 = vpack.c.bf16 %v2437_v10, %v2436_v57 }
 0x4a1   :  { %v5527_v3 = vpop.eup %5526 }
 0x4a2   :  { %5181 = vmatmul.mubr.msk.bf16.vlgmr.msra.gmra.mxu0 %vm2275_vm2, %v2452_v2  ;;  %v2439_v1 = vmul.f32 %v5527_v3, %v6917_v27  ;;  %v5529_v16 = vpop.eup %5528  ;;  %v5399_v3 = vld [vmem:[%s7381_s6 + $0x30] sm:$0xff]  }
 0x4a3   :  { %5191 = vmatpush3.bf16.msra.mxu0 %v1892_v9  ;;  %5192 = vmatprep.mubr.msk.bf16.mxu0 %vm5619_vm0, %v5618_v6  ;;  %v2440_v30 = vmul.f32 %v5529_v16, %v6919_v28 }
 0x4a4   :  { %5202 = vmatprep.subr.bf16.mxu0 %v5618_v6  ;;  %v2453_v13 = vpack.c.bf16 %v2439_v1, %v2438_v0 }
 0x4a5   :  { %v5531_v45 = vpop.eup %5530 }
 0x4a6   :  { %v5533_v18 = vpop.eup %5532  ;;  %5187 = vmatmul.mubr.msk.bf16.vlgmr.msra.gmra.mxu1 %vm2275_vm2, %v2453_v13  ;;  %v2441_v62 = vmul.f32 %v5531_v45, %v6927_v60 }
 0x4a7   :  { %5197 = vmatpush3.bf16.msra.mxu1 %v1893_v17  ;;  %5198 = vmatprep.mubr.msk.bf16.mxu1 %vm5619_vm0, %v5618_v6  ;;  %v2442_v5 = vmul.f32 %v5533_v18, %v6925_v59 }
 0x4a8   :  { %v2454_v9 = vpack.c.bf16 %v2441_v62, %v2440_v30  ;;  %5208 = vmatprep.subr.bf16.mxu1 %v5618_v6 }
 0x4a9   :  { %v5535_v20 = vpop.eup %5534 }
 0x4aa   :  { %v2443_v27 = vmul.f32 %v5535_v20, %v6933_v44  ;;  %5193 = vmatmul.mubr.msk.bf16.vlgmr.msra.gmra.mxu0 %vm2275_vm2, %v2454_v9 }
 0x4ab   :  { %5203 = vmatpush3.bf16.msra.mxu0 %v1894_v25  ;;  %5204 = vmatprep.mubr.msk.bf16.mxu0 %vm5619_vm0, %v5618_v6 }
 0x4ac   :  { %v2455_v28 = vpack.c.bf16 %v2443_v27, %v2442_v5  ;;  %5214 = vmatprep.subr.bf16.mxu0 %v5618_v6 }
 0x4ae   :  { %5199 = vmatmul.mubr.msk.bf16.vlgmr.msra.gmra.mxu1 %vm2275_vm2, %v2455_v28 }
 0x4af   :  { %5209 = vmatpush3.bf16.msra.mxu1 %v1895_v26  ;;  %5210 = vmatprep.mubr.msk.bf16.mxu1 %vm5619_vm0, %v5618_v6 }
 0x4b0   :  { %5220 = vmatprep.subr.bf16.mxu1 %v5618_v6 }
 0x4b1   :  { %v2398_v19 = vpop.xlane.xlu0 %2397 }
 0x4b2   :  { %5536 = vrcp.f32 %v2398_v19 }
 0x4b5   :  { %v2404_v8 = vpop.xlane.xlu0 %2403 }
 0x4b6   :  { %v2401_v17 = vpop.xlane.xlu1 %2400 }
 0x4b7   :  { %5538 = vrcp.f32 %v2401_v17 }
 0x4b8   :  { %5540 = vrcp.f32 %v2404_v8 }
 0x4ba   :  { %v2407_v22 = vpop.xlane.xlu1 %2406 }
 0x4bb   :  { %5542 = vrcp.f32 %v2407_v22 }
 0x4bf   :  { %v5537_v23 = vpop.eup %5536 }
 0x4c0   :  { %v2444_v59 = vmul.f32 %v5537_v23, %v6941_v56 }
 0x4c4   :  { %v5539_v25 = vpop.eup %5538 }
 0x4c5   :  { %v2445_v37 = vmul.f32 %v5539_v25, %v6947_v52  ;;  %v5541_v24 = vpop.eup %5540 }
 0x4c6   :  { %v2446_v44 = vmul.f32 %v5541_v24, %v6945_v63 }
 0x4c7   :  { %v2456_v26 = vpack.c.bf16 %v2445_v37, %v2444_v59 }
 0x4c8   :  { %v5543_v60 = vpop.eup %5542 }
 0x4c9   :  { %5205 = vmatmul.mubr.msk.bf16.vlgmr.msra.gmra.mxu0 %vm2275_vm2, %v2456_v26  ;;  %v2447_v36 = vmul.f32 %v5543_v60, %v6953_v12 }
 0x4ca   :  { %5215 = vmatpush3.bf16.msra.mxu0 %v1896_v11  ;;  %5216 = vmatprep.mubr.msk.bf16.mxu0 %vm5619_vm0, %v5618_v6 }
 0x4cb   :  { %v2457_v43 = vpack.c.bf16 %v2447_v36, %v2446_v44  ;;  %5226 = vmatprep.subr.bf16.mxu0 %v5618_v6 }
 0x4cd   :  { %5211 = vmatmul.mubr.msk.bf16.vlgmr.msra.gmra.mxu1 %vm2275_vm2, %v2457_v43 }
 0x4ce   :  { %5221 = vmatpush3.bf16.msra.mxu1 %v1897_v42  ;;  %5222 = vmatprep.mubr.msk.bf16.mxu1 %vm5619_vm0, %v5618_v6  ;;  %v5392_v42 = vld [vmem:[%s7381_s6 + $0x8] sm:$0xff]  }
 0x4cf   :  { %5234 = vmatprep.subr.bf16.mxu1 %v5618_v6 }
 0x4d1   :  { %v2410_v56 = vpop.xlane.xlu0 %2409 }
 0x4d2   :  { %5544 = vrcp.f32 %v2410_v56 }
 0x4d5   :  { %v2416_v29 = vpop.xlane.xlu0 %2415 }
 0x4d6   :  { %v2413_v35 = vpop.xlane.xlu1 %2412 }
 0x4d7   :  { %5546 = vrcp.f32 %v2413_v35 }
 0x4d8   :  { %5548 = vrcp.f32 %v2416_v29 }
 0x4da   :  { %v2419_v11 = vpop.xlane.xlu1 %2418 }
 0x4db   :  { %5550 = vrcp.f32 %v2419_v11 }
 0x4df   :  { %v5545_v63 = vpop.eup %5544 }
 0x4e0   :  { %v2448_v12 = vmul.f32 %v5545_v63, %v6961_v7  ;;  %v5393_v7 = vld [vmem:[%s7381_s6] sm:$0xff]  }
 0x4e4   :  { %v5547_v52 = vpop.eup %5546 }
 0x4e5   :  { %v2449_v32 = vmul.f32 %v5547_v52, %v6967_v4  ;;  %v5549_v41 = vpop.eup %5548  ;;  %v5394_v4 = vld [vmem:[%s7381_s6 + $0x18] sm:$0xff]  }
 0x4e6   :  { %v2450_v15 = vmul.f32 %v5549_v41, %v6965_v14  ;;  %v5395_v14 = vld [vmem:[%s7381_s6 + $0x10] sm:$0xff]  }
 0x4e7   :  { %v2458_v54 = vpack.c.bf16 %v2449_v32, %v2448_v12 }
 0x4e8   :  { %v5551_v61 = vpop.eup %5550 }
 0x4e9   :  { %5217 = vmatmul.mubr.msk.bf16.vlgmr.msra.gmra.mxu0 %vm2275_vm2, %v2458_v54  ;;  %v2451_v21 = vmul.f32 %v5551_v61, %v6973_v46 }
 0x4ea   :  { %5227 = vmatpush3.bf16.msra.mxu0 %v5392_v42  ;;  %5230 = vmatprep.mubr.msk.bf16.mxu0 %vm5619_vm0, %v5618_v6 }
 0x4eb   :  { %v2459_v33 = vpack.c.bf16 %v2451_v21, %v2450_v15  ;;  %5228 = vmatprep.subr.bf16.mxu0 %v5618_v6  ;;  %v4254_v15 = vld [vmem:[%s7382_s7] ss:$0 sm:$0xff] }
 0x4ed   :  { %5223 = vmatmul.mubr.msk.bf16.vlgmr.msra.gmra.mxu1 %vm2275_vm2, %v2459_v33 }
 0x4ee   :  { %5229 = vmatpush3.bf16.msra.mxu0 %v5393_v7  ;;  %5235 = vmatpush3.bf16.msra.mxu1 %v5394_v4 }
 0x4ef   :  { %5236 = vmatprep.subr.bf16.mxu1 %v5618_v6  ;;  %5242 = vmatprep.subr.bf16.mxu0 %v5618_v6 }
 0x4f0   :  { %5238 = vmatprep.mubr.msk.bf16.mxu1 %vm5619_vm0, %v5618_v6 }
 0x4f2   :  { %5237 = vmatpush3.bf16.msra.mxu1 %v5395_v14 }
 0x4f3   :  { %5250 = vmatprep.subr.bf16.mxu1 %v5618_v6 }
 0x562   :  { %v2497_v34 = vpop.f32.mrf.mxu0 }
 0x564   :  { %v5182_v46 = vpop.f32.mrf.mxu0 }
 0x566   :  { %v2500_v47 = vpop.f32.mrf.mxu0  ;;  %v2541_v39 = vpop.f32.mrf.mxu1 }
 0x567   :  { %v2828_v49 = vpack.c.bf16 %v2500_v47, %v2497_v34 }
 0x568   :  { %v5183_v50 = vpop.f32.mrf.mxu0  ;;  %v5188_v31 = vpop.f32.mrf.mxu1 }
 0x569   :  { %5231 = vmatmul.mubr.msk.bf16.vlgmr.msra.gmra.mxu0 %vm1898_vm1, %v2828_v49  ;;  %v5593_v31 = vld [vmem:[%s7375_s0 + $0x8] sm:$0xff] }
 0x56a   :  { %5243 = vmatpush3.bf16.msra.mxu0 %v5396_v48  ;;  %5246 = vmatprep.mubr.msk.bf16.mxu0 %vm5619_vm0, %v5618_v6  ;;  %v2544_v40 = vpop.f32.mrf.mxu1  ;;  %v2585_v53 = vpop.f32.mrf.mxu0 }
 0x56b   :  { %5244 = vmatprep.subr.bf16.mxu0 %v5618_v6  ;;  %v2829_v51 = vpack.c.bf16 %v2544_v40, %v2541_v39 }
 0x56c   :  { %v5189_v57 = vpop.f32.mrf.mxu1  ;;  %v5194_v10 = vpop.f32.mrf.mxu0 }
 0x56d   :  { %5239 = vmatmul.mubr.msk.bf16.vlgmr.msra.gmra.mxu1 %vm1898_vm1, %v2829_v51 }
 0x56e   :  { %5245 = vmatpush3.bf16.msra.mxu0 %v5397_v38  ;;  %v2588_v58 = vpop.f32.mrf.mxu0  ;;  %v2629_v2 = vpop.f32.mrf.mxu1  ;;  %5251 = vmatpush3.bf16.msra.mxu1 %v5398_v55 }
 0x56f   :  { %5254 = vmatprep.mubr.msk.bf16.mxu1 %vm5619_vm0, %v5618_v6  ;;  %v2830_v0 = vpack.c.bf16 %v2588_v58, %v2585_v53  ;;  %5252 = vmatprep.subr.bf16.mxu1 %v5618_v6 }
 0x570   :  { %5258 = vmatprep.subr.bf16.mxu0 %v5618_v6  ;;  %v5195_v1 = vpop.f32.mrf.mxu0  ;;  %v5200_v16 = vpop.f32.mrf.mxu1 }
 0x571   :  { %5247 = vmatmul.mubr.msk.bf16.vlgmr.msra.gmra.mxu0 %vm1898_vm1, %v2830_v0 }
 0x572   :  { %v2632_v13 = vpop.f32.mrf.mxu1  ;;  %5253 = vmatpush3.bf16.msra.mxu1 %v5399_v3  ;;  %5259 = vmatpush3.bf16.msra.mxu0 %v5392_v42 }
 0x573   :  { %v2831_v45 = vpack.c.bf16 %v2632_v13, %v2629_v2  ;;  %5260 = vmatprep.subr.bf16.mxu0 %v5618_v6  ;;  %5266 = vmatprep.subr.bf16.mxu1 %v5618_v6 }
 0x574   :  { %v5201_v18 = vpop.f32.mrf.mxu1  ;;  %5262 = vmatprep.mubr.msk.bf16.mxu0 %vm5619_vm0, %v5618_v6 }
 0x575   :  { %5255 = vmatmul.mubr.msk.bf16.vlgmr.msra.gmra.mxu1 %vm1898_vm1, %v2831_v45 }
 0x576   :  { %5261 = vmatpush3.bf16.msra.mxu0 %v5393_v7  ;;  %5267 = vmatpush3.bf16.msra.mxu1 %v5394_v4 }
 0x577   :  { %5268 = vmatprep.subr.bf16.mxu1 %v5618_v6  ;;  %5270 = vmatprep.mubr.msk.bf16.mxu1 %vm5619_vm0, %v5618_v6 }
 0x578   :  { %5274 = vmatprep.subr.bf16.mxu0 %v5618_v6 }
 0x57a   :  { %5269 = vmatpush3.bf16.msra.mxu1 %v5395_v14 }
 0x57b   :  { %5282 = vmatprep.subr.bf16.mxu1 %v5618_v6 }
 0x589   :  { %v2673_v30 = vpop.f32.mrf.mxu0 }
 0x58b   :  { %v5206_v62 = vpop.f32.mrf.mxu0 }
 0x58d   :  { %v2676_v20 = vpop.f32.mrf.mxu0  ;;  %v2717_v9 = vpop.f32.mrf.mxu1 }
 0x58e   :  { %v2832_v5 = vpack.c.bf16 %v2676_v20, %v2673_v30 }
 0x58f   :  { %v5207_v27 = vpop.f32.mrf.mxu0  ;;  %v5212_v28 = vpop.f32.mrf.mxu1 }
 0x590   :  { %5263 = vmatmul.mubr.msk.bf16.vlgmr.msra.gmra.mxu0 %vm1898_vm1, %v2832_v5 }
 0x591   :  { %v2720_v19 = vpop.f32.mrf.mxu1  ;;  %5275 = vmatpush3.bf16.msra.mxu0 %v5396_v48  ;;  %5278 = vmatprep.mubr.msk.bf16.mxu0 %vm5619_vm0, %v5618_v6  ;;  %v5592_v48 = vld [vmem:[%s7375_s0] sm:$0xff] }
 0x592   :  { %v2833_v8 = vpack.c.bf16 %v2720_v19, %v2717_v9  ;;  %5276 = vmatprep.subr.bf16.mxu0 %v5618_v6  ;;  %v5594_v19 = vld [vmem:[%s7375_s0 + $0x10] sm:$0xff] }
 0x593   :  { %v5213_v17 = vpop.f32.mrf.mxu1 }
 0x594   :  { %5271 = vmatmul.mubr.msk.bf16.vlgmr.msra.gmra.mxu1 %vm1898_vm1, %v2833_v8 }
 0x595   :  { %5277 = vmatpush3.bf16.msra.mxu0 %v5397_v38  ;;  %5283 = vmatpush3.bf16.msra.mxu1 %v5398_v55 }
 0x596   :  { %5284 = vmatprep.subr.bf16.mxu1 %v5618_v6  ;;  %5286 = vmatprep.mubr.msk.bf16.mxu1 %vm5619_vm0, %v5618_v6 }
 0x599   :  { %5285 = vmatpush3.bf16.msra.mxu1 %v5399_v3 }
 0x5a9   :  { %v2761_v22 = vpop.f32.mrf.mxu0 }
 0x5ab   :  { %v5218_v23 = vpop.f32.mrf.mxu0 }
 0x5ac   :  { %v5595_v23 = vld [vmem:[%s7375_s0 + $0x18] sm:$0xff] }
 0x5ad   :  { %v2764_v25 = vpop.f32.mrf.mxu0  ;;  %v2805_v59 = vpop.f32.mrf.mxu1 }
 0x5ae   :  { %v2834_v37 = vpack.c.bf16 %v2764_v25, %v2761_v22 }
 0x5af   :  { %v5219_v24 = vpop.f32.mrf.mxu0  ;;  %v5224_v26 = vpop.f32.mrf.mxu1 }
 0x5b0   :  { %5279 = vmatmul.mubr.msk.bf16.vlgmr.msra.gmra.mxu0 %vm1898_vm1, %v2834_v37  ;;  %v5402_v37 = vld [vmem:[%s7385_s10 + $0xe4] ss:$16 sps:$4 sm:$0xff]   ;;  %v5403_v24 = vld [vmem:[%s7385_s10 + $0xe8] ss:$16 sps:$4 sm:$0xff]   ;;  %v5405_v26 = vld [vmem:[%s7385_s10 + $0xec] ss:$16 sps:$4 sm:$0xff]  }
 0x5b1   :  { %v2808_v60 = vpop.f32.mrf.mxu1  ;;  %3545 = vmatprep.subr.bf16.mxu0 %v5402_v37  ;;  %3598 = vmatprep.subr.bf16.mxu1 %v5405_v26  ;;  %v4256_v37 = vld [vmem:[%s7384_s9] ss:$0 sm:$0xff] }
 0x5b2   :  { %v2835_v44 = vpack.c.bf16 %v2808_v60, %v2805_v59  ;;  %v5400_v59 = vld [vmem:[%s7385_s10 + $0xe0] ss:$16 sps:$4 sm:$0xff]  }
 0x5b3   :  { %v5225_v36 = vpop.f32.mrf.mxu1  ;;  %3546 = vmatpush1.bf16.msra.mxu0 %v5400_v59 }
 0x5b4   :  { %5287 = vmatmul.mubr.msk.bf16.vlgmr.msra.gmra.mxu1 %vm1898_vm1, %v2835_v44 }
 0x5b5   :  { %3599 = vmatpush1.bf16.msra.mxu1 %v5403_v24 }
 0x629   :  { %v2885_v43 = vpop.f32.mrf.mxu0 }
 0x62b   :  { %v5232_v56 = vpop.f32.mrf.mxu0 }
 0x62d   :  { %v2888_v29 = vpop.f32.mrf.mxu0  ;;  %v2941_v35 = vpop.f32.mrf.mxu1 }
 0x62e   :  { %v3236_v12 = vadd.f32 %v2941_v35, %v2885_v43 }
 0x62f   :  { %v5233_v6 = vpop.f32.mrf.mxu0  ;;  %v5240_v11 = vpop.f32.mrf.mxu1 }
 0x630   :  { %v5408_v11 = vld [vmem:[%s7385_s10 + $0xc4] ss:$16 sps:$4 sm:$0xff]  }
 0x631   :  { %v2944_v63 = vpop.f32.mrf.mxu1  ;;  %v2997_v52 = vpop.f32.mrf.mxu0  ;;  %3547 = vmatprep.subr.bf16.mxu0 %v5408_v11 }
 0x632   :  { %v3237_v42 = vadd.f32 %v3236_v12, %v2997_v52  ;;  %v3239_v21 = vadd.f32 %v2944_v63, %v2888_v29  ;;  %v5411_v63 = vld [vmem:[%s7385_s10 + $0xcc] ss:$16 sps:$4 sm:$0xff]   ;;  %v5406_v52 = vld [vmem:[%s7385_s10 + $0xc0] ss:$16 sps:$4 sm:$0xff]   ;;  %v5409_v12 = vld [vmem:[%s7385_s10 + $0xc8] ss:$16 sps:$4 sm:$0xff]  }
 0x633   :  { %v5241_v32 = vpop.f32.mrf.mxu1  ;;  %v5248_v41 = vpop.f32.mrf.mxu0  ;;  %3600 = vmatprep.subr.bf16.mxu1 %v5411_v63  ;;  %3548 = vmatpush1.bf16.msra.mxu0 %v5406_v52 }
 0x634   :  { %3601 = vmatpush1.bf16.msra.mxu1 %v5409_v12  ;;  %v5414_v32 = vld [vmem:[%s7385_s10 + $0xa4] ss:$16 sps:$4 sm:$0xff]   ;;  %v5417_v41 = vld [vmem:[%s7385_s10 + $0xac] ss:$16 sps:$4 sm:$0xff]  }
 0x635   :  { %v3000_v54 = vpop.f32.mrf.mxu0  ;;  %v3053_v61 = vpop.f32.mrf.mxu1  ;;  %3549 = vmatprep.subr.bf16.mxu0 %v5414_v32  ;;  %3602 = vmatprep.subr.bf16.mxu1 %v5417_v41 }
 0x636   :  { %v3238_v7 = vadd.f32 %v3237_v42, %v3053_v61  ;;  %v3240_v14 = vadd.f32 %v3239_v21, %v3000_v54  ;;  %v5412_v42 = vld [vmem:[%s7385_s10 + $0xa0] ss:$16 sps:$4 sm:$0xff]   ;;  %v5415_v54 = vld [vmem:[%s7385_s10 + $0xa8] ss:$16 sps:$4 sm:$0xff]  }
 0x637   :  { %v5249_v4 = vpop.f32.mrf.mxu0  ;;  %v5256_v33 = vpop.f32.mrf.mxu1  ;;  %3550 = vmatpush1.bf16.msra.mxu0 %v5412_v42  ;;  %v5418_v61 = vld [vmem:[%s7385_s10 + $0x80] ss:$16 sps:$4 sm:$0xff]   ;;  %v5421_v21 = vld [vmem:[%s7385_s10 + $0x88] ss:$16 sps:$4 sm:$0xff]  }
 0x638   :  { %v3255_v34 = vadd.f32 %v4254_v15, %v3238_v7  ;;  %3603 = vmatpush1.bf16.msra.mxu1 %v5415_v54  ;;  %v5423_v7 = vld [vmem:[%s7385_s10 + $0x8c] ss:$16 sps:$4 sm:$0xff]   ;;  %v5426_v4 = vld [vmem:[%s7385_s10 + $0x64] ss:$16 sps:$4 sm:$0xff]  }
 0x639   :  { %v3056_v46 = vpop.f32.mrf.mxu1  ;;  %v5429_v33 = vld [vmem:[%s7385_s10 + $0x6c] ss:$16 sps:$4 sm:$0xff]   ;;  %3604 = vmatprep.subr.bf16.mxu1 %v5423_v7 }
 0x63a   :  { %v3241_v47 = vadd.f32 %v3240_v14, %v3056_v46  ;;  %v7105_v49 = vadd.f32 %v5592_v48, %v3255_v34  ;;  %v5424_v14 = vld [vmem:[%s7385_s10 + $0x60] ss:$16 sps:$4 sm:$0xff]   ;;  %v5427_v34 = vld [vmem:[%s7385_s10 + $0x68] ss:$16 sps:$4 sm:$0xff]   ;;  %v5432_v46 = vld [vmem:[%s7385_s10 + $0x44] ss:$16 sps:$4 sm:$0xff]  }
 0x63b   :  { %v5257_v39 = vpop.f32.mrf.mxu1  ;;  %v5620_v48 = vmov 0   ;;  %v5450_v7 = vld [vmem:[%s7387_s12 + $0x38] sm:$0xff]  }
 0x63c   :  { %v3256_v50 = vadd.f32 %v4254_v15, %v3241_v47  ;;  %3265 = vadd.xlane.f32.xlu0 %v7105_v49  ;;  %3605 = vmatpush1.bf16.msra.mxu1 %v5421_v21  ;;  %v5435_v47 = vld [vmem:[%s7385_s10 + $0x4c] ss:$16 sps:$4 sm:$0xff]   ;;  %v5430_v39 = vld [vmem:[%s7385_s10 + $0x40] ss:$16 sps:$4 sm:$0xff]  }
 0x63d   :  { %3606 = vmatprep.subr.bf16.mxu1 %v5429_v33  ;;  %3577 = vmatprep.mubr.bf16.mxu0 %v5620_v48  ;;  %v5449_v21 = vld [vmem:[%s7387_s12 + $0xf8] sm:$0xff]   ;;  %v5452_v33 = vld [vmem:[%s7387_s12 + $0x70] sm:$0xff]  }
 0x63e   :  { %v7111_v38 = vadd.f32 %v5593_v31, %v3256_v50  ;;  %3630 = vmatprep.mubr.bf16.mxu1 %v5620_v48  ;;  %v5433_v50 = vld [vmem:[%s7385_s10 + $0x48] ss:$16 sps:$4 sm:$0xff]   ;;  %v5438_v31 = vld [vmem:[%s7385_s10 + $0x24] ss:$16 sps:$4 sm:$0xff]  }
 0x640   :  { %3267 = vadd.xlane.f32.xlu1 %v7111_v38  ;;  %3607 = vmatpush1.bf16.msra.mxu1 %v5427_v34  ;;  %v5454_v34 = vld [vmem:[%s7387_s12 + $0x30] sm:$0xff]  }
 0x641   :  { %3608 = vmatprep.subr.bf16.mxu1 %v5435_v47  ;;  %v5456_v47 = vld [vmem:[%s7387_s12 + $0x68] sm:$0xff]  }
 0x644   :  { %3609 = vmatpush1.bf16.msra.mxu1 %v5433_v50  ;;  %v5459_v50 = vld [vmem:[%s7387_s12 + $0xa8] sm:$0xff]  }
 0x650   :  { %v3097_v40 = vpop.f32.mrf.mxu0 }
 0x652   :  { %v5264_v53 = vpop.f32.mrf.mxu0 }
 0x653   :  { %v5436_v53 = vld [vmem:[%s7385_s10 + $0x20] ss:$16 sps:$4 sm:$0xff]  }
 0x654   :  { %v3100_v55 = vpop.f32.mrf.mxu0  ;;  %v3141_v51 = vpop.f32.mrf.mxu1 }
 0x655   :  { %v3242_v0 = vadd.f32 %v3141_v51, %v3097_v40  ;;  %v5441_v40 = vld [vmem:[%s7385_s10 + $0x2c] ss:$16 sps:$4 sm:$0xff]   ;;  %v5444_v51 = vld [vmem:[%s7385_s10 + $0x4] ss:$16 sps:$4 sm:$0xff]  }
 0x656   :  { %v5265_v57 = vpop.f32.mrf.mxu0  ;;  %v5272_v10 = vpop.f32.mrf.mxu1  ;;  %3610 = vmatprep.subr.bf16.mxu1 %v5441_v40  ;;  %v5461_v40 = vld [vmem:[%s7387_s12 + $0xe0] sm:$0xff]  }
 0x657   :  { %v5447_v57 = vld [vmem:[%s7385_s10 + $0xc] ss:$16 sps:$4 sm:$0xff]   ;;  %v5442_v10 = vld [vmem:[%s7385_s10] ss:$16 sps:$4 sm:$0xff]  }
 0x658   :  { %v3144_v58 = vpop.f32.mrf.mxu1 }
 0x659   :  { %v3245_v18 = vadd.f32 %v3144_v58, %v3100_v55  ;;  %v5439_v55 = vld [vmem:[%s7385_s10 + $0x28] ss:$16 sps:$4 sm:$0xff]  }
 0x65a   :  { %v5273_v2 = vpop.f32.mrf.mxu1  ;;  %3611 = vmatpush1.bf16.msra.mxu1 %v5439_v55  ;;  %v5445_v58 = vld [vmem:[%s7385_s10 + $0x8] ss:$16 sps:$4 sm:$0xff]   ;;  %v5463_v55 = vld [vmem:[%s7387_s12 + $0xa0] sm:$0xff]  }
 0x65b   :  { %3612 = vmatprep.subr.bf16.mxu1 %v5447_v57  ;;  %v5465_v57 = vld [vmem:[%s7387_s12 + $0xd8] sm:$0xff]  }
 0x65e   :  { %3613 = vmatpush1.bf16.msra.mxu1 %v5445_v58  ;;  %v5467_v58 = vld [vmem:[%s7387_s12 + $0x98] sm:$0xff]  }
 0x65f   :  { %4622 = vmatprep.subr.bf16.mxu1 %v5449_v21 }
 0x670   :  { %v3185_v3 = vpop.f32.mrf.mxu0 }
 0x671   :  { %v3243_v16 = vadd.f32 %v3242_v0, %v3185_v3 }
 0x672   :  { %v5280_v1 = vpop.f32.mrf.mxu0 }
 0x674   :  { %v3188_v13 = vpop.f32.mrf.mxu0  ;;  %v3229_v45 = vpop.f32.mrf.mxu1 }
 0x675   :  { %v3244_v30 = vadd.f32 %v3243_v16, %v3229_v45  ;;  %v3246_v9 = vadd.f32 %v3245_v18, %v3188_v13 }
 0x676   :  { %v5281_v62 = vpop.f32.mrf.mxu0  ;;  %v5288_v20 = vpop.f32.mrf.mxu1 }
 0x677   :  { %v3257_v5 = vadd.f32 %v4254_v15, %v3244_v30 }
 0x678   :  { %v3232_v27 = vpop.f32.mrf.mxu1 }
 0x679   :  { %v3247_v28 = vadd.f32 %v3246_v9, %v3232_v27  ;;  %v7117_v8 = vadd.f32 %v5594_v19, %v3257_v5 }
 0x67a   :  { %v5289_v17 = vpop.f32.mrf.mxu1 }
 0x67b   :  { %v3258_v22 = vadd.f32 %v4254_v15, %v3247_v28  ;;  %3269 = vadd.xlane.f32.xlu0 %v7117_v8  ;;  %v5420_v15 = vld [vmem:[%s7385_s10 + $0x84] ss:$16 sps:$4 sm:$0xff]   ;;  %v4255_v17 = vld [vmem:[%s7383_s8] ss:$0 sm:$0xff] }
 0x67c   :  { %3551 = vmatprep.subr.bf16.mxu0 %v5420_v15  ;;  %v5448_v15 = vld [vmem:[%s7387_s12 + $0x78] sm:$0xff]  }
 0x67d   :  { %v7123_v25 = vadd.f32 %v5595_v23, %v3258_v22  ;;  %3552 = vmatpush1.bf16.msra.mxu0 %v5418_v61 }
 0x67e   :  { %3553 = vmatprep.subr.bf16.mxu0 %v5426_v4  ;;  %v5451_v4 = vld [vmem:[%s7387_s12 + $0xb8] sm:$0xff]  }
 0x67f   :  { %3271 = vadd.xlane.f32.xlu1 %v7123_v25 }
 0x681   :  { %3554 = vmatpush1.bf16.msra.mxu0 %v5424_v14  ;;  %v5453_v14 = vld [vmem:[%s7387_s12 + $0xf0] sm:$0xff]  }
 0x682   :  { %3555 = vmatprep.subr.bf16.mxu0 %v5432_v46  ;;  %v5455_v46 = vld [vmem:[%s7387_s12 + $0xb0] sm:$0xff]  }
 0x685   :  { %3556 = vmatpush1.bf16.msra.mxu0 %v5430_v39  ;;  %v5458_v39 = vld [vmem:[%s7387_s12 + $0x28] sm:$0xff]  }
 0x686   :  { %3557 = vmatprep.subr.bf16.mxu0 %v5438_v31  ;;  %v5460_v31 = vld [vmem:[%s7387_s12 + $0x60] sm:$0xff]  }
 0x689   :  { %3558 = vmatpush1.bf16.msra.mxu0 %v5436_v53  ;;  %v5462_v53 = vld [vmem:[%s7387_s12 + $0x20] sm:$0xff]  }
 0x68a   :  { %3559 = vmatprep.subr.bf16.mxu0 %v5444_v51  ;;  %v5464_v51 = vld [vmem:[%s7387_s12 + $0x58] sm:$0xff]  }
 0x68d   :  { %3560 = vmatpush1.bf16.msra.mxu0 %v5442_v10  ;;  %v5466_v10 = vld [vmem:[%s7387_s12 + $0x18] sm:$0xff]  }
 0x68e   :  { %4594 = vmatprep.subr.bf16.mxu0 %v5448_v15 }
 0x6c5   :  { %v3266_v60 = vpop.xlane.xlu0 %3265 }
 0x6c6   :  { %v3273_v44 = vmul.f32 0.0078125, %v3266_v60 }
 0x6c8   :  { %v7139_v36 = vsub.f32 %v7105_v49, %v3273_v44 }
 0x6c9   :  { %v3268_v43 = vpop.xlane.xlu1 %3267 }
 0x6ca   :  { %v3274_v56 = vmul.f32 0.0078125, %v3268_v43  ;;  %v3281_v29 = vmul.f32 %v7139_v36, %v7139_v36 }
 0x6cc   :  { %v7144_v35 = vsub.f32 %v7111_v38, %v3274_v56  ;;  %3285 = vadd.xlane.f32.xlu0 %v3281_v29 }
 0x6ce   :  { %v3282_v6 = vmul.f32 %v7144_v35, %v7144_v35 }
 0x6d0   :  { %3287 = vadd.xlane.f32.xlu1 %v3282_v6 }
 0x704   :  { %v3270_v2 = vpop.xlane.xlu0 %3269 }
 0x705   :  { %v3275_v3 = vmul.f32 0.0078125, %v3270_v2  ;;  %v5468_v2 = vld [vmem:[%s7387_s12 + $0x50] sm:$0xff]  }
 0x707   :  { %v3279_v0 = vsub.f32 %v7117_v8, %v3275_v3  ;;  %v5469_v3 = vld [vmem:[%s7387_s12 + $0xd0] sm:$0xff]  }
 0x708   :  { %v3272_v1 = vpop.xlane.xlu1 %3271 }
 0x709   :  { %v3276_v16 = vmul.f32 0.0078125, %v3272_v1  ;;  %v3283_v13 = vmul.f32 %v3279_v0, %v3279_v0  ;;  %v5471_v1 = vld [vmem:[%s7387_s12 + $0x90] sm:$0xff]  }
 0x70b   :  { %v3280_v45 = vsub.f32 %v7123_v25, %v3276_v16  ;;  %3289 = vadd.xlane.f32.xlu0 %v3283_v13  ;;  %v5472_v16 = vld [vmem:[%s7387_s12 + $0x48] sm:$0xff]  }
 0x70c   :  { %v5473_v13 = vld [vmem:[%s7387_s12 + $0xc8] sm:$0xff]  }
 0x70d   :  { %v3284_v18 = vmul.f32 %v3280_v45, %v3280_v45 }
 0x70f   :  { %3291 = vadd.xlane.f32.xlu1 %v3284_v18  ;;  %v5475_v18 = vld [vmem:[%s7387_s12 + $0x88] sm:$0xff]  }
 0x755   :  { %v3286_v30 = vpop.xlane.xlu0 %3285 }
 0x756   :  { %v3293_v62 = vmul.f32 0.0078125, %v3286_v30  ;;  %v5476_v30 = vld [vmem:[%s7387_s12 + $0x40] sm:$0xff]  }
 0x758   :  { %v3297_v20 = vadd.f32 1e-05, %v3293_v62  ;;  %v5477_v62 = vld [vmem:[%s7387_s12 + $0xc0] sm:$0xff]  }
 0x759   :  { %v3288_v9 = vpop.xlane.xlu1 %3287 }
 0x75a   :  { %5552 = vrsqrt.f32 %v3297_v20  ;;  %v3294_v5 = vmul.f32 0.0078125, %v3288_v9  ;;  %v5478_v20 = vld [vmem:[%s7387_s12] sm:$0xff]  }
 0x75b   :  { %v5479_v9 = vld [vmem:[%s7387_s12 + $0x80] sm:$0xff]  }
 0x75c   :  { %v3298_v27 = vadd.f32 1e-05, %v3294_v5  ;;  %v3365_v5 = vlaneseq }
 0x75e   :  { %5554 = vrsqrt.f32 %v3298_v27  ;;  %v3366_v27 = vshrl.u32 %v3365_v5, 7 }
 0x767   :  { %v5553_v28 = vpop.eup %5552 }
 0x768   :  { %v3305_v19 = vmul.f32 %v5553_v28, %v7139_v36  ;;  %v3367_v28 = vsub.s32 0, %v3366_v27 }
 0x76a   :  { %v3315_v59 = vmul.f32 %v4255_v17, %v3305_v19  ;;  %v3375_v19 = vsub.s32 2, %v3366_v27 }
 0x76b   :  { %v5555_v22 = vpop.eup %5554 }
 0x76c   :  { %v3306_v23 = vmul.f32 %v5555_v22, %v7144_v35  ;;  %v3325_v26 = vadd.f32 %v4256_v37, %v3315_v59  ;;  %v3371_v22 = vsub.s32 1, %v3366_v27 }
 0x76e   :  { %v3316_v24 = vmul.f32 %v4255_v17, %v3306_v23  ;;  %v3379_v23 = vsub.s32 3, %v3366_v27 }
 0x770   :  { %v3326_v60 = vadd.f32 %v4256_v37, %v3316_v24 }
 0x772   :  { %v3329_v44 = vpack.c.bf16 %v3326_v60, %v3325_v26 }
 0x774   :  { %3578 = vmatmul.mubr.bf16.vlgmr.msra.gmra.mxu0 %v3329_v44  ;;  %3631 = vmatmul.mubr.bf16.vlgmr.msra.gmra.mxu1 %v3329_v44 }
 0x775   :  { %3587 = vmatprep.mubr.bf16.mxu0 %v5620_v48  ;;  %3640 = vmatprep.mubr.bf16.mxu1 %v5620_v48  ;;  %v5457_v48 = vld [vmem:[%s7387_s12 + $0xe8] sm:$0xff]  }
 0x776   :  { %4595 = vmatpush3.bf16.msra.mxu0 %v5450_v7  ;;  %4623 = vmatpush3.bf16.msra.mxu1 %v5451_v4 }
 0x777   :  { %4596 = vmatprep.subr.bf16.mxu0 %v5452_v33  ;;  %4624 = vmatprep.subr.bf16.mxu1 %v5453_v14 }
 0x77a   :  { %4597 = vmatpush3.bf16.msra.mxu0 %v5454_v34  ;;  %4625 = vmatpush3.bf16.msra.mxu1 %v5455_v46 }
 0x77b   :  { %4598 = vmatprep.subr.bf16.mxu0 %v5456_v47  ;;  %4626 = vmatprep.subr.bf16.mxu1 %v5457_v48 }
 0x77e   :  { %4599 = vmatpush3.bf16.msra.mxu0 %v5458_v39  ;;  %4627 = vmatpush3.bf16.msra.mxu1 %v5459_v50 }
 0x77f   :  { %4600 = vmatprep.subr.bf16.mxu0 %v5460_v31  ;;  %4628 = vmatprep.subr.bf16.mxu1 %v5461_v40 }
 0x782   :  { %4601 = vmatpush3.bf16.msra.mxu0 %v5462_v53  ;;  %4629 = vmatpush3.bf16.msra.mxu1 %v5463_v55 }
 0x783   :  { %4602 = vmatprep.subr.bf16.mxu0 %v5464_v51  ;;  %4630 = vmatprep.subr.bf16.mxu1 %v5465_v57 }
 0x786   :  { %4603 = vmatpush3.bf16.msra.mxu0 %v5466_v10  ;;  %4631 = vmatpush3.bf16.msra.mxu1 %v5467_v58 }
 0x787   :  { %4604 = vmatprep.subr.bf16.mxu0 %v5468_v2  ;;  %4632 = vmatprep.subr.bf16.mxu1 %v5469_v3 }
 0x78a   :  { %4633 = vmatpush3.bf16.msra.mxu1 %v5471_v1 }
 0x78b   :  { %4634 = vmatprep.subr.bf16.mxu1 %v5473_v13 }
 0x78e   :  { %4635 = vmatpush3.bf16.msra.mxu1 %v5475_v18 }
 0x78f   :  { %4636 = vmatprep.subr.bf16.mxu1 %v5477_v62 }
 0x792   :  { %4637 = vmatpush3.bf16.msra.mxu1 %v5479_v9 }
 0x794   :  { %v3290_v36 = vpop.xlane.xlu0 %3289 }
 0x795   :  { %v3295_v43 = vmul.f32 0.0078125, %v3290_v36 }
 0x797   :  { %v3299_v56 = vadd.f32 1e-05, %v3295_v43 }
 0x798   :  { %v3292_v29 = vpop.xlane.xlu1 %3291 }
 0x799   :  { %5556 = vrsqrt.f32 %v3299_v56  ;;  %v3296_v6 = vmul.f32 0.0078125, %v3292_v29 }
 0x79b   :  { %v3300_v35 = vadd.f32 1e-05, %v3296_v6 }
 0x79d   :  { %5558 = vrsqrt.f32 %v3300_v35 }
 0x7a6   :  { %v5557_v11 = vpop.eup %5556 }
 0x7a7   :  { %v3307_v63 = vmul.f32 %v5557_v11, %v3279_v0  ;;  %v5470_v0 = vld [vmem:[%s7387_s12 + $0x10] sm:$0xff]  }
 0x7a8   :  { %4605 = vmatpush3.bf16.msra.mxu0 %v5470_v0 }
 0x7a9   :  { %v3317_v32 = vmul.f32 %v4255_v17, %v3307_v63  ;;  %4606 = vmatprep.subr.bf16.mxu0 %v5472_v16 }
 0x7aa   :  { %v5559_v52 = vpop.eup %5558 }
 0x7ab   :  { %v3308_v12 = vmul.f32 %v5559_v52, %v3280_v45  ;;  %v3327_v42 = vadd.f32 %v4256_v37, %v3317_v32  ;;  %v5474_v45 = vld [vmem:[%s7387_s12 + $0x8] sm:$0xff]  }
 0x7ac   :  { %4607 = vmatpush3.bf16.msra.mxu0 %v5474_v45 }
 0x7ad   :  { %v3318_v41 = vmul.f32 %v4255_v17, %v3308_v12  ;;  %4608 = vmatprep.subr.bf16.mxu0 %v5476_v30  ;;  %v3363_v17 = vld [vmem:[%s7386_s11] sm:$0xf] }
 0x7ae   :  { %v7341_v59 = vrot.slane %v3363_v17, %v3367_v28  ;;  %v7345_v60 = vrot.slane %v3363_v17, %v3371_v22  ;;  %v7347_v44 = vrot.slane %v3363_v17, %v3379_v23 }
 0x7af   :  { %v3328_v54 = vadd.f32 %v4256_v37, %v3318_v41  ;;  %v7343_v37 = vrot.slane %v3363_v17, %v3375_v19 }
 0x7b0   :  { %4609 = vmatpush3.bf16.msra.mxu0 %v5478_v20 }
 0x7b1   :  { %v3330_v61 = vpack.c.bf16 %v3328_v54, %v3327_v42 }
 0x7b3   :  { %3588 = vmatmul.mubr.bf16.gmra.mxu0 %v3330_v61  ;;  %3641 = vmatmul.mubr.bf16.gmra.mxu1 %v3330_v61 }
 0x834   :  { %v3579_v24 = vpop.f32.mrf.mxu0  ;;  %v3632_v26 = vpop.f32.mrf.mxu1 }
 0x835   :  { %v3580_v36 = vadd.f32 %v3579_v24, %v7341_v59  ;;  %v3633_v43 = vadd.f32 %v3632_v26, %v7343_v37 }
 0x836   :  { %v3581_v56 = vpop.f32.mrf.mxu0  ;;  %v3634_v29 = vpop.f32.mrf.mxu1 }
 0x837   :  { %v3667_v6 = vmul.f32 0.70710677, %v3580_v36  ;;  %v3669_v35 = vmul.f32 0.70710677, %v3633_v43  ;;  %v3582_v11 = vadd.f32 %v3581_v56, %v7345_v60  ;;  %v3635_v63 = vadd.f32 %v3634_v29, %v7347_v44 }
 0x838   :  { %v3583_v52 = vpop.f32.mrf.mxu0  ;;  %v3636_v12 = vpop.f32.mrf.mxu1  ;;  %v3651_v40 = vmul.f32 0.5, %v3580_v36  ;;  %v3653_v9 = vmul.f32 0.5, %v3633_v43 }
 0x839   :  { %v3584_v32 = vadd.f32 %v3583_v52, %v7341_v59  ;;  %v3637_v41 = vadd.f32 %v3636_v12, %v7343_v37  ;;  %5560 = verf.f32 %v3667_v6  ;;  %v3668_v42 = vmul.f32 0.70710677, %v3582_v11 }
 0x83a   :  { %v3585_v54 = vpop.f32.mrf.mxu0  ;;  %v3638_v61 = vpop.f32.mrf.mxu1  ;;  %5562 = verf.f32 %v3669_v35  ;;  %v3670_v15 = vmul.f32 0.70710677, %v3635_v63  ;;  %v3652_v53 = vmul.f32 0.5, %v3582_v11  ;;  %v3654_v18 = vmul.f32 0.5, %v3635_v63 }
 0x83b   :  { %v3671_v21 = vmul.f32 0.70710677, %v3584_v32  ;;  %5564 = verf.f32 %v3668_v42  ;;  %v3673_v7 = vmul.f32 0.70710677, %v3637_v41  ;;  %v3586_v4 = vadd.f32 %v3585_v54, %v7345_v60 }
 0x83c   :  { %v3639_v33 = vadd.f32 %v3638_v61, %v7347_v44  ;;  %5566 = verf.f32 %v3670_v15  ;;  %v3655_v2 = vmul.f32 0.5, %v3584_v32  ;;  %v3657_v16 = vmul.f32 0.5, %v3637_v41 }
 0x83d   :  { %5568 = verf.f32 %v3671_v21  ;;  %v3672_v14 = vmul.f32 0.70710677, %v3586_v4  ;;  %v3656_v13 = vmul.f32 0.5, %v3586_v4 }
 0x83e   :  { %5570 = verf.f32 %v3673_v7  ;;  %v3674_v34 = vmul.f32 0.70710677, %v3639_v33  ;;  %v3658_v62 = vmul.f32 0.5, %v3639_v33 }
 0x83f   :  { %5572 = verf.f32 %v3672_v14 }
 0x840   :  { %5574 = verf.f32 %v3674_v34 }
 0x846   :  { %v5561_v46 = vpop.eup %5560 }
 0x847   :  { %v5563_v47 = vpop.eup %5562  ;;  %v3699_v10 = vadd.f32 1.0, %v5561_v46 }
 0x848   :  { %v5565_v48 = vpop.eup %5564  ;;  %v3701_v1 = vadd.f32 1.0, %v5563_v47 }
 0x849   :  { %v5567_v39 = vpop.eup %5566  ;;  %v3700_v55 = vadd.f32 1.0, %v5565_v48  ;;  %v3715_v19 = vmul.f32 %v3699_v10, %v3651_v40 }
 0x84a   :  { %v5569_v50 = vpop.eup %5568  ;;  %v3702_v58 = vadd.f32 1.0, %v5567_v39  ;;  %v3717_v23 = vmul.f32 %v3701_v1, %v3653_v9 }
 0x84b   :  { %v5571_v31 = vpop.eup %5570  ;;  %v3703_v51 = vadd.f32 1.0, %v5569_v50  ;;  %v3716_v5 = vmul.f32 %v3700_v55, %v3652_v53 }
 0x84c   :  { %v5573_v57 = vpop.eup %5572  ;;  %v3705_v3 = vadd.f32 1.0, %v5571_v31  ;;  %v3718_v17 = vmul.f32 %v3702_v58, %v3654_v18 }
 0x84d   :  { %v5575_v0 = vpop.eup %5574  ;;  %v3704_v45 = vadd.f32 1.0, %v5573_v57  ;;  %v3719_v30 = vmul.f32 %v3703_v51, %v3655_v2 }
 0x84e   :  { %v3706_v20 = vadd.f32 1.0, %v5575_v0  ;;  %v3721_v27 = vmul.f32 %v3705_v3, %v3657_v16 }
 0x84f   :  { %v3720_v28 = vmul.f32 %v3704_v45, %v3656_v13  ;;  %v3731_v26 = vpack.c.bf16 %v3719_v30, %v3715_v19 }
 0x850   :  { %v3722_v22 = vmul.f32 %v3706_v20, %v3658_v62  ;;  %v3733_v56 = vpack.c.bf16 %v3721_v27, %v3717_v23 }
 0x851   :  { %v3732_v24 = vpack.c.bf16 %v3720_v28, %v3716_v5 }
 0x852   :  { %v3734_v36 = vpack.c.bf16 %v3722_v22, %v3718_v17 }
 0x853   :  { %4034 = vmatprep.mubr.bf16.mxu0 %v3732_v24 }
 0x854   :  { %4083 = vmatprep.mubr.bf16.mxu1 %v3734_v36  ;;  %4035 = vmatmul.mubr.bf16.vlgmr.msra.gmra.mxu0 %v3731_v26 }
 0x855   :  { %4084 = vmatmul.mubr.bf16.vlgmr.msra.gmra.mxu1 %v3733_v56 }
 0x873   :  { %v3589_v29 = vpop.f32.mrf.mxu0  ;;  %v3642_v6 = vpop.f32.mrf.mxu1 }
 0x874   :  { %v3590_v35 = vadd.f32 %v3589_v29, %v7341_v59  ;;  %v3643_v43 = vadd.f32 %v3642_v6, %v7343_v37 }
 0x875   :  { %v3591_v11 = vpop.f32.mrf.mxu0  ;;  %v3644_v63 = vpop.f32.mrf.mxu1 }
 0x876   :  { %v3675_v52 = vmul.f32 0.70710677, %v3590_v35  ;;  %v3677_v12 = vmul.f32 0.70710677, %v3643_v43  ;;  %v3592_v32 = vadd.f32 %v3591_v11, %v7345_v60  ;;  %v3645_v41 = vadd.f32 %v3644_v63, %v7347_v44 }
 0x877   :  { %v3593_v42 = vpop.f32.mrf.mxu0  ;;  %v3646_v54 = vpop.f32.mrf.mxu1  ;;  %v3659_v55 = vmul.f32 0.5, %v3590_v35  ;;  %v3661_v9 = vmul.f32 0.5, %v3643_v43  ;;  %v4289_v35 = vld [vmem:[%s7388_s13] ss:$0 sm:$0xff]  ;;  %s5621_s13 = smov [#allocation2]  }
 0x878   :  { %v3594_v61 = vadd.f32 %v3593_v42, %v7341_v59  ;;  %v3647_v15 = vadd.f32 %v3646_v54, %v7343_v37  ;;  %5576 = verf.f32 %v3675_v52  ;;  %v3676_v21 = vmul.f32 0.70710677, %v3592_v32  ;;  %s4113_s19 = sshll.u32 %s5621_s13, 4  ;;  %s4114_s19 = int_to_ptr.vmem [resolvable:$true] %s4113_s19 }
 0x879   :  { %v3595_v7 = vpop.f32.mrf.mxu0  ;;  %v3648_v4 = vpop.f32.mrf.mxu1  ;;  %5578 = verf.f32 %v3677_v12  ;;  %v3678_v33 = vmul.f32 0.70710677, %v3645_v41  ;;  %v3660_v51 = vmul.f32 0.5, %v3592_v32  ;;  %v3662_v18 = vmul.f32 0.5, %v3645_v41  ;;  %s5596_s20 = scalar_lea.vmem %s4114_s19, 512  ;;  %p5601_p1 = scmp.lt.s32.totalorder %s4114_s19, %s4114_s19 }
 0x87a   :  { %v3679_v14 = vmul.f32 0.70710677, %v3594_v61  ;;  %5580 = verf.f32 %v3676_v21  ;;  %v3681_v34 = vmul.f32 0.70710677, %v3647_v15  ;;  %v3596_v46 = vadd.f32 %v3595_v7, %v7345_v60  ;;  %p5597_p0 = scmp.ne.s32.totalorder %s4114_s19, %s5596_s20  ;;  %p5602_p2 = scmp.lt.s32.totalorder %s5596_s20, %s5596_s20 }
 0x87b   :  { %v3649_v47 = vadd.f32 %v3648_v4, %v7347_v44  ;;  %5582 = verf.f32 %v3678_v33  ;;  %v3663_v2 = vmul.f32 0.5, %v3594_v61  ;;  %v3665_v16 = vmul.f32 0.5, %v3647_v15 }
 0x87c   :  { %5584 = verf.f32 %v3679_v14  ;;  %v3680_v48 = vmul.f32 0.70710677, %v3596_v46  ;;  %v3664_v13 = vmul.f32 0.5, %v3596_v46  ;;  %p5603_p3 = por %p5602_p2, %p5601_p1 }
 0x87d   :  { %5586 = verf.f32 %v3681_v34  ;;  %v3682_v59 = vmul.f32 0.70710677, %v3649_v47  ;;  %v3666_v62 = vmul.f32 0.5, %v3649_v47 }
 0x87e   :  { %5588 = verf.f32 %v3680_v48  ;;  %p5604_p4 = pnand %p5603_p3, %p5597_p0 }
 0x87f   :  { %5590 = verf.f32 %v3682_v59 }
 0x885   :  { %v5577_v37 = vpop.eup %5576 }
 0x886   :  { %v5579_v39 = vpop.eup %5578  ;;  %v3707_v58 = vadd.f32 1.0, %v5577_v37 }
 0x887   :  { %v5581_v50 = vpop.eup %5580  ;;  %v3709_v1 = vadd.f32 1.0, %v5579_v39 }
 0x888   :  { %v5583_v31 = vpop.eup %5582  ;;  %v3708_v57 = vadd.f32 1.0, %v5581_v50  ;;  %v3723_v19 = vmul.f32 %v3707_v58, %v3659_v55 }
 0x889   :  { %v5585_v40 = vpop.eup %5584  ;;  %v3710_v44 = vadd.f32 1.0, %v5583_v31  ;;  %v3725_v23 = vmul.f32 %v3709_v1, %v3661_v9 }
 0x88a   :  { %v5587_v53 = vpop.eup %5586  ;;  %v3711_v10 = vadd.f32 1.0, %v5585_v40  ;;  %v3724_v5 = vmul.f32 %v3708_v57, %v3660_v51 }
 0x88b   :  { %v5589_v60 = vpop.eup %5588  ;;  %v3713_v3 = vadd.f32 1.0, %v5587_v53  ;;  %v3726_v17 = vmul.f32 %v3710_v44, %v3662_v18 }
 0x88c   :  { %v5591_v0 = vpop.eup %5590  ;;  %v3712_v45 = vadd.f32 1.0, %v5589_v60  ;;  %v3727_v30 = vmul.f32 %v3711_v10, %v3663_v2 }
 0x88d   :  { %v3714_v20 = vadd.f32 1.0, %v5591_v0  ;;  %v3729_v27 = vmul.f32 %v3713_v3, %v3665_v16 }
 0x88e   :  { %v3728_v28 = vmul.f32 %v3712_v45, %v3664_v13  ;;  %v3735_v36 = vpack.c.bf16 %v3727_v30, %v3723_v19 }
 0x88f   :  { %v3730_v22 = vmul.f32 %v3714_v20, %v3666_v62  ;;  %v3737_v56 = vpack.c.bf16 %v3729_v27, %v3725_v23 }
 0x890   :  { %v3736_v24 = vpack.c.bf16 %v3728_v28, %v3724_v5 }
 0x891   :  { %v3738_v26 = vpack.c.bf16 %v3730_v22, %v3726_v17 }
 0x892   :  { %4042 = vmatprep.mubr.bf16.mxu0 %v3736_v24 }
 0x893   :  { %4091 = vmatprep.mubr.bf16.mxu1 %v3738_v26  ;;  %4043 = vmatmul.mubr.bf16.gmra.mxu0 %v3735_v36 }
 0x894   :  { %4092 = vmatmul.mubr.bf16.gmra.mxu1 %v3737_v56 }
 0x914   :  { %v4610_v29 = vpop.f32.mrf.mxu0 }
 0x915   :  { %v4638_v6 = vpop.f32.mrf.mxu1 }
 0x916   :  { %v4611_v43 = vpop.f32.mrf.mxu0 }
 0x917   :  { %v4612_v11 = vadd.f32 %v4611_v43, %v4610_v29  ;;  %v4639_v63 = vpop.f32.mrf.mxu1 }
 0x918   :  { %v4613_v52 = vpop.f32.mrf.mxu0  ;;  %v4640_v32 = vadd.f32 %v4639_v63, %v4638_v6 }
 0x919   :  { %v4037_v12 = vadd.f32 %v4612_v11, %v4289_v35  ;;  %v4641_v41 = vpop.f32.mrf.mxu1 }
 0x91a   :  { %v4614_v42 = vpop.f32.mrf.mxu0 }
 0x91b   :  { %v4086_v54 = vadd.f32 %v4640_v32, %v4037_v12  ;;  %v4615_v61 = vadd.f32 %v4614_v42, %v4613_v52  ;;  %v4642_v15 = vpop.f32.mrf.mxu1 }
 0x91c   :  { %v4643_v4 = vadd.f32 %v4642_v15, %v4641_v41 }
 0x91d   :  { %v4100_v21 = vadd.f32 %v4086_v54, %v7105_v49  ;;  %v4040_v7 = vadd.f32 %v4615_v61, %v4289_v35 }
 0x91f   :  { %4104 = vst [vmem:[#allocation2] sm:$0xff] %v4100_v21  ;;  %v4089_v33 = vadd.f32 %v4643_v4, %v4040_v7 }
 0x921   :  { %v4101_v14 = vadd.f32 %v4089_v33, %v7111_v38 }
 0x923   :  { %4105 = vst [vmem:[#allocation2 + $0x8] sm:$0xff] %v4101_v14 }
 0x953   :  { %v4616_v34 = vpop.f32.mrf.mxu0 }
 0x954   :  { %v4644_v46 = vpop.f32.mrf.mxu1 }
 0x955   :  { %v4617_v47 = vpop.f32.mrf.mxu0 }
 0x956   :  { %v4618_v48 = vadd.f32 %v4617_v47, %v4616_v34  ;;  %v4645_v59 = vpop.f32.mrf.mxu1 }
 0x957   :  { %v4619_v37 = vpop.f32.mrf.mxu0  ;;  %v4646_v50 = vadd.f32 %v4645_v59, %v4644_v46 }
 0x958   :  { %v4045_v39 = vadd.f32 %v4618_v48, %v4289_v35  ;;  %v4647_v31 = vpop.f32.mrf.mxu1 }
 0x959   :  { %v4620_v40 = vpop.f32.mrf.mxu0 }
 0x95a   :  { %v4094_v53 = vadd.f32 %v4646_v50, %v4045_v39  ;;  %v4621_v55 = vadd.f32 %v4620_v40, %v4619_v37  ;;  %v4648_v49 = vpop.f32.mrf.mxu1 }
 0x95b   :  { %v4649_v10 = vadd.f32 %v4648_v49, %v4647_v31 }
 0x95c   :  { %v4102_v51 = vadd.f32 %v4094_v53, %v7117_v8  ;;  %v4048_v57 = vadd.f32 %v4621_v55, %v4289_v35 }
 0x95e   :  { %4106 = vst [vmem:[#allocation2 + $0x10] sm:$0xff] %v4102_v51  ;;  %v4097_v38 = vadd.f32 %v4649_v10, %v4048_v57 }
 0x960   :  { %v4103_v60 = vadd.f32 %v4097_v38, %v7123_v25 }
 0x962   :  { %4107 = vst [vmem:[#allocation2 + $0x18] sm:$0xff] %v4103_v60 }
 0x963   :  { %5607 = shalt.err (!%p5604_p4)
}
 0x964   :  { %s5622_s3 = smov 128   ;;  %s5623_s0 = smov 8  }
 0x965   :  { %4119 = dma.vmem_to_hbm [thread:$0]  %s4114_s19, 512, %s7389_s14, [#allocation3], %s5622_s3, %s5622_s3, %s5623_s0  }
 0x966   :  { %5616 = dma.done.wait [#allocation3], 512  }
 0x967   :  { %5617 = vsyncadd [#allocation3], 4294966784 }
 0x968   :  { %4123 = vsyncpa [#allocation3], 1 }

</bundles_post_ra>
